<compile_context>
chip_gen: v7x
topology: tpu7x:2x2x1
jax: 0.10.0
libtpu: 0.0.40
codegen_flags: <defaults>
</compile_context>

<pallas_src>
import jax
import jax.numpy as jnp
from jax.experimental import pallas as pl
from jax.experimental.pallas import tpu as pltpu


# --------------------------------------------------------------------------
# Single fused kernel: dual char-LSTM + PropSig MLP + gather + merge Linear.
# Grid-less; all operands resident in VMEM; time loop unrolled in-kernel with
# h/c carried in vregs.
# --------------------------------------------------------------------------
def _fused_encoder_kernel(tok_i_ref, tok_o_ref, len_i_ref, len_o_ref,
                          exw_i_ref, exw_o_ref, whh_ref, bias_ref,
                          idx_ref, feat_ref, w1_ref, b1_ref, w2_ref, b2_ref,
                          wchar_ref, wsig_ref, bm_ref, out_ref):
    tn = tok_i_ref.shape[0]                     # T_MAX * N
    n = len_i_ref.shape[0]                      # examples (multiple of 8)
    t_max = tn // n
    v_pad = exw_i_ref.shape[0]                  # padded vocab (lane-dense)
    h8 = whh_ref.shape[1]                       # 8H
    hidden = h8 // 8
    h2 = 2 * hidden
    num_tasks = feat_ref.shape[0]

    # ---- embedding lookup + input projection for ALL timesteps at once ----
    # embed[tok] @ W_ih^T == one_hot(tok) @ (embed @ W_ih^T); the folded table
    # (exw_*) was computed in f32 at init and already column-interleaved into
    # the 8H fused-gate layout (other encoder's columns are zero).
    tok_i = tok_i_ref[...]                      # (T*N, 1) int32
    tok_o = tok_o_ref[...]
    iota_v = jax.lax.broadcasted_iota(jnp.int32, (tn, v_pad), 1)
    oh_i = (iota_v == tok_i).astype(jnp.bfloat16)          # (T*N, V_pad)
    oh_o = (iota_v == tok_o).astype(jnp.bfloat16)
    gates_x = (jnp.dot(oh_i, exw_i_ref[...], preferred_element_type=jnp.float32)
               + jnp.dot(oh_o, exw_o_ref[...], preferred_element_type=jnp.float32)
               + bias_ref[...])                             # (T*N, 8H) f32

    # per-column sequence lengths for the fused (N, 2H) state: first H lanes
    # belong to the input encoder, last H lanes to the output encoder.
    lane = jax.lax.broadcasted_iota(jnp.int32, (n, h2), 1)
    lens_cat = jnp.where(lane < hidden, len_i_ref[...], len_o_ref[...])

    whh = whh_ref[...]                                      # (2H, 8H) bf16
    h = jnp.zeros((n, h2), jnp.float32)                     # [h_in | h_out]
    c = jnp.zeros((n, h2), jnp.float32)
    # Static unroll over time (T_MAX small); one block-diagonal recurrent
    # matmul per step produces BOTH encoders' gates (8H = 256 lanes).
    for t in range(t_max):
        # n % 8 == 0 -> this row slice stays within (8,128) tile boundaries.
        g = gates_x[t * n:(t + 1) * n, :] + jnp.dot(
            h.astype(jnp.bfloat16), whh, preferred_element_type=jnp.float32)
        # full-vreg nonlinearities, then lane-contiguous per-gate slices
        sig_all = jax.nn.sigmoid(g)                         # (N, 8H)
        tanh_all = jnp.tanh(g)                              # (N, 8H)
        i_g = sig_all[:, 0 * h2:1 * h2]
        f_g = sig_all[:, 1 * h2:2 * h2]
        g_g = tanh_all[:, 2 * h2:3 * h2]
        o_g = sig_all[:, 3 * h2:4 * h2]
        c_new = f_g * c + i_g * g_g
        h_new = o_g * jnp.tanh(c_new)
        # packed-sequence semantics: state only advances while t < length
        mask = lens_cat > t
        h = jnp.where(mask, h_new, h)
        c = jnp.where(mask, c_new, c)
    # h == torch.cat((input_embed, output_embed), dim=-1)   (N, 2H)

    # ---- PropSig MLP: Linear -> ReLU -> Linear -> (num_tasks, 2H) ----
    hs = jnp.dot(feat_ref[...].astype(jnp.bfloat16), w1_ref[...],
                 preferred_element_type=jnp.float32) + b1_ref[...]
    hs = jnp.maximum(hs, 0.0)
    sig = jnp.dot(hs.astype(jnp.bfloat16), w2_ref[...],
                  preferred_element_type=jnp.float32) + b2_ref[...]

    # ---- repeat_sig = sig[sample_scatter_idx] via VPU selects ----
    # num_tasks is tiny; a broadcast-compare + where per task beats a
    # degenerate K=num_tasks MXU matmul.
    idx = idx_ref[...]                                      # (N, 1) int32
    rep = jnp.zeros((n, h2), jnp.float32)
    for task in range(num_tasks):
        rep = jnp.where(idx == task, sig[task:task + 1, :], rep)

    # ---- merge Linear over the implicit concat [char_cat_embed, repeat_sig]
    # merge weight pre-split into two row blocks, so no concat materializes.
    out_ref[...] = (
        jnp.dot(h.astype(jnp.bfloat16), wchar_ref[...],
                preferred_element_type=jnp.float32)
        + jnp.dot(rep.astype(jnp.bfloat16), wsig_ref[...],
                  preferred_element_type=jnp.float32)
        + bm_ref[...])


# --------------------------------------------------------------------------
# Full forward: CharAndPropSigIOEncoder
# --------------------------------------------------------------------------
def char_and_prop_sig_io_encoder(params, tokens_i, len_i, tokens_o, len_o,
                                 feat_mat, sample_scatter_idx):
    t_i, n = tokens_i.shape
    t_o, _ = tokens_o.shape
    assert n % 8 == 0, "examples dimension must be a multiple of 8"
    t_max = max(t_i, t_o)
    hidden = params["whh_bd"].shape[0] // 2

    # tiny int32 glue only: pad both char streams to a common T and flatten
    # time-major so rows [t*N:(t+1)*N] are timestep t across all examples.
    pad_i = jnp.pad(tokens_i, ((0, t_max - t_i), (0, 0))).reshape(t_max * n, 1)
    pad_o = jnp.pad(tokens_o, ((0, t_max - t_o), (0, 0))).reshape(t_max * n, 1)
    len_i_col = len_i.astype(jnp.int32).reshape(n, 1)
    len_o_col = len_o.astype(jnp.int32).reshape(n, 1)
    idx_col = sample_scatter_idx.astype(jnp.int32).reshape(n, 1)

    vmem = pl.BlockSpec(memory_space=pltpu.MemorySpace.VMEM)
    merged = pl.pallas_call(
        _fused_encoder_kernel,
        out_shape=jax.ShapeDtypeStruct((n, 2 * hidden), jnp.float32),
        in_specs=[vmem] * 17,
        out_specs=vmem,
    )(pad_i, pad_o, len_i_col, len_o_col,
      params["exw_i"], params["exw_o"], params["whh_bd"], params["bias_cat"],
      idx_col, feat_mat,
      params["mlp_w1_t"], params["mlp_b1"], params["mlp_w2_t"],
      params["mlp_b2"], params["merge_w_char"], params["merge_w_sig"],
      params["merge_b"])
    return merged, sample_scatter_idx


# --------------------------------------------------------------------------
# Deterministic parameter init (PyTorch-style weights).
#  - embed @ W_ih^T folded in f32, then column-interleaved into the fused
#    8H gate layout and cast once to bf16.
#  - W_hh of both encoders packed as one block-diagonal (2H, 8H) matrix.
#  - merge Linear weight split by input block (char_cat / repeat_sig).
# --------------------------------------------------------------------------
def init_params(key, hidden, vocab_i, vocab_o, feat_dim5, v_pad=128):
    assert vocab_i <= v_pad and vocab_o <= v_pad
    ks = jax.random.split(key, 16)
    s = 0.05

    def nrm(k, shape):
        return jax.random.normal(k, shape, jnp.float32) * s

    # per-encoder PyTorch-layout LSTM params (gate chunk order i, f, g, o)
    emb_i = nrm(ks[0], (vocab_i, hidden))
    w_ih_i = nrm(ks[1], (4 * hidden, hidden))
    w_hh_i = nrm(ks[2], (4 * hidden, hidden))
    b_i = nrm(ks[3], (4 * hidden,)) + nrm(ks[4], (4 * hidden,))   # b_ih + b_hh
    emb_o = nrm(ks[5], (vocab_o, hidden))
    w_ih_o = nrm(ks[6], (4 * hidden, hidden))
    w_hh_o = nrm(ks[7], (4 * hidden, hidden))
    b_o = nrm(ks[8], (4 * hidden,)) + nrm(ks[9], (4 * hidden,))

    # fold embedding through W_ih in f32 (single bf16 rounding later)
    exw_i = emb_i @ w_ih_i.T                                      # (V_i, 4H)
    exw_o = emb_o @ w_ih_o.T                                      # (V_o, 4H)

    # column-interleave the two encoders' 4H gate columns into the fused 8H
    # layout [i_in, i_out, f_in, f_out, g_in, g_out, o_in, o_out]
    def to_wide_cols(mat4h, enc):
        rows = mat4h.shape[0]
        wide = jnp.zeros((rows, 8 * hidden), jnp.float32)
        for gi in range(4):
            col0 = gi * 2 * hidden + enc * hidden
            wide = wide.at[:, col0:col0 + hidden].set(
                mat4h[:, gi * hidden:(gi + 1) * hidden])
        return wide

    exw_i_wide = jnp.zeros((v_pad, 8 * hidden), jnp.float32
                           ).at[:vocab_i].set(to_wide_cols(exw_i, 0))
    exw_o_wide = jnp.zeros((v_pad, 8 * hidden), jnp.float32
                           ).at[:vocab_o].set(to_wide_cols(exw_o, 1))

    # block-diagonal recurrent weight: h_cat (N,2H) @ whh_bd (2H,8H)
    whh_bd = jnp.zeros((2 * hidden, 8 * hidden), jnp.float32)
    whh_bd = whh_bd.at[:hidden].set(to_wide_cols(w_hh_i.T, 0))
    whh_bd = whh_bd.at[hidden:].set(to_wide_cols(w_hh_o.T, 1))

    bias_cat = (to_wide_cols(b_i.reshape(1, -1), 0)
                + to_wide_cols(b_o.reshape(1, -1), 1))            # (1, 8H) f32

    # merge Linear(4H, 2H); concat order [char_in, char_out, repeat_sig]
    merge_w_t = nrm(ks[14], (2 * hidden, 4 * hidden)).T           # (4H, 2H)

    return {
        "exw_i": exw_i_wide.astype(jnp.bfloat16),                 # (V_pad, 8H)
        "exw_o": exw_o_wide.astype(jnp.bfloat16),
        "whh_bd": whh_bd.astype(jnp.bfloat16),                    # (2H, 8H)
        "bias_cat": bias_cat,                                     # (1, 8H) f32
        # PropSig MLP: Linear(feat_dim*5, 2H), ReLU, Linear(2H, 2H)
        "mlp_w1_t": nrm(ks[10], (2 * hidden, feat_dim5)).T.astype(jnp.bfloat16),
        "mlp_b1": nrm(ks[11], (2 * hidden,)).reshape(1, -1),
        "mlp_w2_t": nrm(ks[12], (2 * hidden, 2 * hidden)).T.astype(jnp.bfloat16),
        "mlp_b2": nrm(ks[13], (2 * hidden,)).reshape(1, -1),
        "merge_w_char": merge_w_t[:2 * hidden].astype(jnp.bfloat16),
        "merge_w_sig": merge_w_t[2 * hidden:].astype(jnp.bfloat16),
        "merge_b": nrm(ks[15], (2 * hidden,)).reshape(1, -1),
    }


if __name__ == "__main__":
    hidden = 32
    max_num_inputs = 2
    # synthetic property_signatures constants
    NUM_SINGLE_VALUE_PROPERTIES = 4
    NUM_COMPARISON_PROPERTIES = 3
    num_sigs = NUM_SINGLE_VALUE_PROPERTIES + NUM_COMPARISON_PROPERTIES
    feat_dim = num_sigs * max_num_inputs + NUM_SINGLE_VALUE_PROPERTIES   # 18
    feat_dim5 = 5 * feat_dim                                             # 90

    vocab_i, vocab_o = 30, 28
    T_i, T_o = 10, 8
    num_tasks = 2
    examples_per_task = (3, 5)
    N = sum(examples_per_task)                                           # 8

    key = jax.random.PRNGKey(0)
    k_par, k_ti, k_to, k_li, k_lo, k_sig = jax.random.split(key, 6)

    params = init_params(k_par, hidden, vocab_i, vocab_o, feat_dim5)

    # tokenized, padded char sequences (host-side string encoding is glue)
    tokens_i = jax.random.randint(k_ti, (T_i, N), 1, vocab_i, jnp.int32)
    tokens_o = jax.random.randint(k_to, (T_o, N), 1, vocab_o, jnp.int32)
    len_i = jax.random.randint(k_li, (N,), 3, T_i + 1, jnp.int32)
    len_o = jax.random.randint(k_lo, (N,), 3, T_o + 1, jnp.int32)

    # one-hot property-signature feature matrix: feat[s, i*5 + sig] = 1.0
    sig_choices = jax.random.randint(k_sig, (num_tasks, feat_dim), 0, 5)
    feat_mat = jax.nn.one_hot(sig_choices, 5, dtype=jnp.float32).reshape(
        num_tasks, feat_dim5)

    sample_scatter_idx = jnp.concatenate([
        jnp.full((ne,), t, jnp.int32)
        for t, ne in enumerate(examples_per_task)])

    fwd = jax.jit(char_and_prop_sig_io_encoder)
    merged_embed, scatter_idx = fwd(params, tokens_i, len_i, tokens_o, len_o,
                                    feat_mat, sample_scatter_idx)
    jax.block_until_ready(merged_embed)
    assert merged_embed.shape == (N, 2 * hidden)
    assert scatter_idx.shape == (N,)
    assert bool(jnp.all(jnp.isfinite(merged_embed)))
    print("KERNEL_OK")
</pallas_src>

<mosaic_0001>
module attributes {stable_mosaic.version = 11 : i64} {
  func.func @_fused_encoder_kernel(%arg0: memref<80x1xi32, #tpu.memory_space<vmem>>, %arg1: memref<80x1xi32, #tpu.memory_space<vmem>>, %arg2: memref<8x1xi32, #tpu.memory_space<vmem>>, %arg3: memref<8x1xi32, #tpu.memory_space<vmem>>, %arg4: memref<128x256xbf16, #tpu.memory_space<vmem>>, %arg5: memref<128x256xbf16, #tpu.memory_space<vmem>>, %arg6: memref<64x256xbf16, #tpu.memory_space<vmem>>, %arg7: memref<1x256xf32, #tpu.memory_space<vmem>>, %arg8: memref<8x1xi32, #tpu.memory_space<vmem>>, %arg9: memref<2x90xf32, #tpu.memory_space<vmem>>, %arg10: memref<90x64xbf16, #tpu.memory_space<vmem>>, %arg11: memref<1x64xf32, #tpu.memory_space<vmem>>, %arg12: memref<64x64xbf16, #tpu.memory_space<vmem>>, %arg13: memref<1x64xf32, #tpu.memory_space<vmem>>, %arg14: memref<64x64xbf16, #tpu.memory_space<vmem>>, %arg15: memref<64x64xbf16, #tpu.memory_space<vmem>>, %arg16: memref<1x64xf32, #tpu.memory_space<vmem>>, %arg17: memref<8x64xf32, #tpu.memory_space<vmem>>) attributes {dimension_semantics = [], scalar_prefetch = 0 : i64, scratch_operands = 0 : i64, tpu.core_type = #tpu.core_type<tc>} {
    %c0 = arith.constant 0 : index
    %c0_0 = arith.constant 0 : index
    %0 = vector.load %arg0[%c0, %c0_0] : memref<80x1xi32, #tpu.memory_space<vmem>>, vector<80x1xi32>
    %c0_1 = arith.constant 0 : index
    %c0_2 = arith.constant 0 : index
    %1 = vector.load %arg1[%c0_1, %c0_2] : memref<80x1xi32, #tpu.memory_space<vmem>>, vector<80x1xi32>
    %2 = tpu.iota {dimensions = array<i32: 1>} : vector<80x128xi32>
    %3 = vector.broadcast %0 : vector<80x1xi32> to vector<80x128xi32>
    %4 = arith.cmpi eq, %2, %3 : vector<80x128xi32>
    %5 = arith.extui %4 : vector<80x128xi1> to vector<80x128xi32>
    %6 = arith.sitofp %5 : vector<80x128xi32> to vector<80x128xf32>
    %7 = arith.truncf %6 : vector<80x128xf32> to vector<80x128xbf16>
    %8 = vector.broadcast %1 : vector<80x1xi32> to vector<80x128xi32>
    %9 = arith.cmpi eq, %2, %8 : vector<80x128xi32>
    %10 = arith.extui %9 : vector<80x128xi1> to vector<80x128xi32>
    %11 = arith.sitofp %10 : vector<80x128xi32> to vector<80x128xf32>
    %12 = arith.truncf %11 : vector<80x128xf32> to vector<80x128xbf16>
    %c0_3 = arith.constant 0 : index
    %c0_4 = arith.constant 0 : index
    %13 = vector.load %arg4[%c0_3, %c0_4] : memref<128x256xbf16, #tpu.memory_space<vmem>>, vector<128x256xbf16>
    %cst = arith.constant dense<0.000000e+00> : vector<80x256xf32>
    %14 = tpu.matmul %7, %13, %cst {dimension_numbers = #tpu.dot_dimension_numbers<[1], [0], [0], [1], [0, 0, 1, 1], [], []>} : vector<80x128xbf16>, vector<128x256xbf16>, vector<80x256xf32> -> vector<80x256xf32>
    %c0_5 = arith.constant 0 : index
    %c0_6 = arith.constant 0 : index
    %15 = vector.load %arg5[%c0_5, %c0_6] : memref<128x256xbf16, #tpu.memory_space<vmem>>, vector<128x256xbf16>
    %cst_7 = arith.constant dense<0.000000e+00> : vector<80x256xf32>
    %16 = tpu.matmul %12, %15, %cst_7 {dimension_numbers = #tpu.dot_dimension_numbers<[1], [0], [0], [1], [0, 0, 1, 1], [], []>} : vector<80x128xbf16>, vector<128x256xbf16>, vector<80x256xf32> -> vector<80x256xf32>
    %17 = arith.addf %14, %16 : vector<80x256xf32>
    %c0_8 = arith.constant 0 : index
    %c0_9 = arith.constant 0 : index
    %18 = vector.load %arg7[%c0_8, %c0_9] : memref<1x256xf32, #tpu.memory_space<vmem>>, vector<1x256xf32>
    %19 = vector.broadcast %18 : vector<1x256xf32> to vector<80x256xf32>
    %20 = arith.addf %17, %19 : vector<80x256xf32>
    %21 = tpu.iota {dimensions = array<i32: 1>} : vector<8x64xi32>
    %c32_i32 = arith.constant 32 : i32
    %22 = vector.broadcast %c32_i32 : i32 to vector<8x64xi32>
    %23 = arith.cmpi slt, %21, %22 : vector<8x64xi32>
    %c0_10 = arith.constant 0 : index
    %c0_11 = arith.constant 0 : index
    %24 = vector.load %arg2[%c0_10, %c0_11] : memref<8x1xi32, #tpu.memory_space<vmem>>, vector<8x1xi32>
    %c0_12 = arith.constant 0 : index
    %c0_13 = arith.constant 0 : index
    %25 = vector.load %arg3[%c0_12, %c0_13] : memref<8x1xi32, #tpu.memory_space<vmem>>, vector<8x1xi32>
    %26 = vector.shape_cast %24 : vector<8x1xi32> to vector<8x1xi32>
    %27 = vector.broadcast %26 : vector<8x1xi32> to vector<8x64xi32>
    %28 = vector.shape_cast %25 : vector<8x1xi32> to vector<8x1xi32>
    %29 = vector.broadcast %28 : vector<8x1xi32> to vector<8x64xi32>
    %30 = arith.select %23, %27, %29 : vector<8x64xi1>, vector<8x64xi32>
    %c0_14 = arith.constant 0 : index
    %c0_15 = arith.constant 0 : index
    %31 = vector.load %arg6[%c0_14, %c0_15] : memref<64x256xbf16, #tpu.memory_space<vmem>>, vector<64x256xbf16>
    %cst_16 = arith.constant 0.000000e+00 : f32
    %32 = vector.broadcast %cst_16 : f32 to vector<8x64xf32>
    %cst_17 = arith.constant 0.000000e+00 : f32
    %33 = vector.broadcast %cst_17 : f32 to vector<8x64xf32>
    %34 = vector.extract_strided_slice %20 {offsets = [0, 0], sizes = [8, 256], strides = [1, 1]} : vector<80x256xf32> to vector<8x256xf32>
    %35 = arith.truncf %32 : vector<8x64xf32> to vector<8x64xbf16>
    %cst_18 = arith.constant dense<0.000000e+00> : vector<8x256xf32>
    %36 = tpu.matmul %35, %31, %cst_18 {dimension_numbers = #tpu.dot_dimension_numbers<[1], [0], [0], [1], [0, 0, 1, 1], [], []>} : vector<8x64xbf16>, vector<64x256xbf16>, vector<8x256xf32> -> vector<8x256xf32>
    %37 = arith.addf %34, %36 : vector<8x256xf32>
    %38 = arith.negf %37 : vector<8x256xf32>
    %39 = math.exp %38 : vector<8x256xf32>
    %cst_19 = arith.constant 1.000000e+00 : f32
    %40 = vector.broadcast %cst_19 : f32 to vector<8x256xf32>
    %41 = arith.addf %40, %39 : vector<8x256xf32>
    %42 = arith.divf %40, %41 : vector<8x256xf32>
    %43 = math.tanh %37 : vector<8x256xf32>
    %44 = vector.extract_strided_slice %42 {offsets = [0, 0], sizes = [8, 64], strides = [1, 1]} : vector<8x256xf32> to vector<8x64xf32>
    %45 = vector.extract_strided_slice %42 {offsets = [0, 64], sizes = [8, 64], strides = [1, 1]} : vector<8x256xf32> to vector<8x64xf32>
    %46 = vector.extract_strided_slice %43 {offsets = [0, 128], sizes = [8, 64], strides = [1, 1]} : vector<8x256xf32> to vector<8x64xf32>
    %47 = vector.extract_strided_slice %42 {offsets = [0, 192], sizes = [8, 64], strides = [1, 1]} : vector<8x256xf32> to vector<8x64xf32>
    %48 = arith.mulf %45, %33 : vector<8x64xf32>
    %49 = arith.mulf %44, %46 : vector<8x64xf32>
    %50 = arith.addf %48, %49 : vector<8x64xf32>
    %51 = math.tanh %50 : vector<8x64xf32>
    %52 = arith.mulf %47, %51 : vector<8x64xf32>
    %c0_i32 = arith.constant 0 : i32
    %53 = vector.broadcast %c0_i32 : i32 to vector<8x64xi32>
    %54 = arith.cmpi sgt, %30, %53 : vector<8x64xi32>
    %55 = arith.select %54, %52, %32 : vector<8x64xi1>, vector<8x64xf32>
    %56 = arith.select %54, %50, %33 : vector<8x64xi1>, vector<8x64xf32>
    %57 = vector.extract_strided_slice %20 {offsets = [8, 0], sizes = [8, 256], strides = [1, 1]} : vector<80x256xf32> to vector<8x256xf32>
    %58 = arith.truncf %55 : vector<8x64xf32> to vector<8x64xbf16>
    %cst_20 = arith.constant dense<0.000000e+00> : vector<8x256xf32>
    %59 = tpu.matmul %58, %31, %cst_20 {dimension_numbers = #tpu.dot_dimension_numbers<[1], [0], [0], [1], [0, 0, 1, 1], [], []>} : vector<8x64xbf16>, vector<64x256xbf16>, vector<8x256xf32> -> vector<8x256xf32>
    %60 = arith.addf %57, %59 : vector<8x256xf32>
    %61 = arith.negf %60 : vector<8x256xf32>
    %62 = math.exp %61 : vector<8x256xf32>
    %cst_21 = arith.constant 1.000000e+00 : f32
    %63 = vector.broadcast %cst_21 : f32 to vector<8x256xf32>
    %64 = arith.addf %63, %62 : vector<8x256xf32>
    %65 = arith.divf %63, %64 : vector<8x256xf32>
    %66 = math.tanh %60 : vector<8x256xf32>
    %67 = vector.extract_strided_slice %65 {offsets = [0, 0], sizes = [8, 64], strides = [1, 1]} : vector<8x256xf32> to vector<8x64xf32>
    %68 = vector.extract_strided_slice %65 {offsets = [0, 64], sizes = [8, 64], strides = [1, 1]} : vector<8x256xf32> to vector<8x64xf32>
    %69 = vector.extract_strided_slice %66 {offsets = [0, 128], sizes = [8, 64], strides = [1, 1]} : vector<8x256xf32> to vector<8x64xf32>
    %70 = vector.extract_strided_slice %65 {offsets = [0, 192], sizes = [8, 64], strides = [1, 1]} : vector<8x256xf32> to vector<8x64xf32>
    %71 = arith.mulf %68, %56 : vector<8x64xf32>
    %72 = arith.mulf %67, %69 : vector<8x64xf32>
    %73 = arith.addf %71, %72 : vector<8x64xf32>
    %74 = math.tanh %73 : vector<8x64xf32>
    %75 = arith.mulf %70, %74 : vector<8x64xf32>
    %c1_i32 = arith.constant 1 : i32
    %76 = vector.broadcast %c1_i32 : i32 to vector<8x64xi32>
    %77 = arith.cmpi sgt, %30, %76 : vector<8x64xi32>
    %78 = arith.select %77, %75, %55 : vector<8x64xi1>, vector<8x64xf32>
    %79 = arith.select %77, %73, %56 : vector<8x64xi1>, vector<8x64xf32>
    %80 = vector.extract_strided_slice %20 {offsets = [16, 0], sizes = [8, 256], strides = [1, 1]} : vector<80x256xf32> to vector<8x256xf32>
    %81 = arith.truncf %78 : vector<8x64xf32> to vector<8x64xbf16>
    %cst_22 = arith.constant dense<0.000000e+00> : vector<8x256xf32>
    %82 = tpu.matmul %81, %31, %cst_22 {dimension_numbers = #tpu.dot_dimension_numbers<[1], [0], [0], [1], [0, 0, 1, 1], [], []>} : vector<8x64xbf16>, vector<64x256xbf16>, vector<8x256xf32> -> vector<8x256xf32>
    %83 = arith.addf %80, %82 : vector<8x256xf32>
    %84 = arith.negf %83 : vector<8x256xf32>
    %85 = math.exp %84 : vector<8x256xf32>
    %cst_23 = arith.constant 1.000000e+00 : f32
    %86 = vector.broadcast %cst_23 : f32 to vector<8x256xf32>
    %87 = arith.addf %86, %85 : vector<8x256xf32>
    %88 = arith.divf %86, %87 : vector<8x256xf32>
    %89 = math.tanh %83 : vector<8x256xf32>
    %90 = vector.extract_strided_slice %88 {offsets = [0, 0], sizes = [8, 64], strides = [1, 1]} : vector<8x256xf32> to vector<8x64xf32>
    %91 = vector.extract_strided_slice %88 {offsets = [0, 64], sizes = [8, 64], strides = [1, 1]} : vector<8x256xf32> to vector<8x64xf32>
    %92 = vector.extract_strided_slice %89 {offsets = [0, 128], sizes = [8, 64], strides = [1, 1]} : vector<8x256xf32> to vector<8x64xf32>
    %93 = vector.extract_strided_slice %88 {offsets = [0, 192], sizes = [8, 64], strides = [1, 1]} : vector<8x256xf32> to vector<8x64xf32>
    %94 = arith.mulf %91, %79 : vector<8x64xf32>
    %95 = arith.mulf %90, %92 : vector<8x64xf32>
    %96 = arith.addf %94, %95 : vector<8x64xf32>
    %97 = math.tanh %96 : vector<8x64xf32>
    %98 = arith.mulf %93, %97 : vector<8x64xf32>
    %c2_i32 = arith.constant 2 : i32
    %99 = vector.broadcast %c2_i32 : i32 to vector<8x64xi32>
    %100 = arith.cmpi sgt, %30, %99 : vector<8x64xi32>
    %101 = arith.select %100, %98, %78 : vector<8x64xi1>, vector<8x64xf32>
    %102 = arith.select %100, %96, %79 : vector<8x64xi1>, vector<8x64xf32>
    %103 = vector.extract_strided_slice %20 {offsets = [24, 0], sizes = [8, 256], strides = [1, 1]} : vector<80x256xf32> to vector<8x256xf32>
    %104 = arith.truncf %101 : vector<8x64xf32> to vector<8x64xbf16>
    %cst_24 = arith.constant dense<0.000000e+00> : vector<8x256xf32>
    %105 = tpu.matmul %104, %31, %cst_24 {dimension_numbers = #tpu.dot_dimension_numbers<[1], [0], [0], [1], [0, 0, 1, 1], [], []>} : vector<8x64xbf16>, vector<64x256xbf16>, vector<8x256xf32> -> vector<8x256xf32>
    %106 = arith.addf %103, %105 : vector<8x256xf32>
    %107 = arith.negf %106 : vector<8x256xf32>
    %108 = math.exp %107 : vector<8x256xf32>
    %cst_25 = arith.constant 1.000000e+00 : f32
    %109 = vector.broadcast %cst_25 : f32 to vector<8x256xf32>
    %110 = arith.addf %109, %108 : vector<8x256xf32>
    %111 = arith.divf %109, %110 : vector<8x256xf32>
    %112 = math.tanh %106 : vector<8x256xf32>
    %113 = vector.extract_strided_slice %111 {offsets = [0, 0], sizes = [8, 64], strides = [1, 1]} : vector<8x256xf32> to vector<8x64xf32>
    %114 = vector.extract_strided_slice %111 {offsets = [0, 64], sizes = [8, 64], strides = [1, 1]} : vector<8x256xf32> to vector<8x64xf32>
    %115 = vector.extract_strided_slice %112 {offsets = [0, 128], sizes = [8, 64], strides = [1, 1]} : vector<8x256xf32> to vector<8x64xf32>
    %116 = vector.extract_strided_slice %111 {offsets = [0, 192], sizes = [8, 64], strides = [1, 1]} : vector<8x256xf32> to vector<8x64xf32>
    %117 = arith.mulf %114, %102 : vector<8x64xf32>
    %118 = arith.mulf %113, %115 : vector<8x64xf32>
    %119 = arith.addf %117, %118 : vector<8x64xf32>
    %120 = math.tanh %119 : vector<8x64xf32>
    %121 = arith.mulf %116, %120 : vector<8x64xf32>
    %c3_i32 = arith.constant 3 : i32
    %122 = vector.broadcast %c3_i32 : i32 to vector<8x64xi32>
    %123 = arith.cmpi sgt, %30, %122 : vector<8x64xi32>
    %124 = arith.select %123, %121, %101 : vector<8x64xi1>, vector<8x64xf32>
    %125 = arith.select %123, %119, %102 : vector<8x64xi1>, vector<8x64xf32>
    %126 = vector.extract_strided_slice %20 {offsets = [32, 0], sizes = [8, 256], strides = [1, 1]} : vector<80x256xf32> to vector<8x256xf32>
    %127 = arith.truncf %124 : vector<8x64xf32> to vector<8x64xbf16>
    %cst_26 = arith.constant dense<0.000000e+00> : vector<8x256xf32>
    %128 = tpu.matmul %127, %31, %cst_26 {dimension_numbers = #tpu.dot_dimension_numbers<[1], [0], [0], [1], [0, 0, 1, 1], [], []>} : vector<8x64xbf16>, vector<64x256xbf16>, vector<8x256xf32> -> vector<8x256xf32>
    %129 = arith.addf %126, %128 : vector<8x256xf32>
    %130 = arith.negf %129 : vector<8x256xf32>
    %131 = math.exp %130 : vector<8x256xf32>
    %cst_27 = arith.constant 1.000000e+00 : f32
    %132 = vector.broadcast %cst_27 : f32 to vector<8x256xf32>
    %133 = arith.addf %132, %131 : vector<8x256xf32>
    %134 = arith.divf %132, %133 : vector<8x256xf32>
    %135 = math.tanh %129 : vector<8x256xf32>
    %136 = vector.extract_strided_slice %134 {offsets = [0, 0], sizes = [8, 64], strides = [1, 1]} : vector<8x256xf32> to vector<8x64xf32>
    %137 = vector.extract_strided_slice %134 {offsets = [0, 64], sizes = [8, 64], strides = [1, 1]} : vector<8x256xf32> to vector<8x64xf32>
    %138 = vector.extract_strided_slice %135 {offsets = [0, 128], sizes = [8, 64], strides = [1, 1]} : vector<8x256xf32> to vector<8x64xf32>
    %139 = vector.extract_strided_slice %134 {offsets = [0, 192], sizes = [8, 64], strides = [1, 1]} : vector<8x256xf32> to vector<8x64xf32>
    %140 = arith.mulf %137, %125 : vector<8x64xf32>
    %141 = arith.mulf %136, %138 : vector<8x64xf32>
    %142 = arith.addf %140, %141 : vector<8x64xf32>
    %143 = math.tanh %142 : vector<8x64xf32>
    %144 = arith.mulf %139, %143 : vector<8x64xf32>
    %c4_i32 = arith.constant 4 : i32
    %145 = vector.broadcast %c4_i32 : i32 to vector<8x64xi32>
    %146 = arith.cmpi sgt, %30, %145 : vector<8x64xi32>
    %147 = arith.select %146, %144, %124 : vector<8x64xi1>, vector<8x64xf32>
    %148 = arith.select %146, %142, %125 : vector<8x64xi1>, vector<8x64xf32>
    %149 = vector.extract_strided_slice %20 {offsets = [40, 0], sizes = [8, 256], strides = [1, 1]} : vector<80x256xf32> to vector<8x256xf32>
    %150 = arith.truncf %147 : vector<8x64xf32> to vector<8x64xbf16>
    %cst_28 = arith.constant dense<0.000000e+00> : vector<8x256xf32>
    %151 = tpu.matmul %150, %31, %cst_28 {dimension_numbers = #tpu.dot_dimension_numbers<[1], [0], [0], [1], [0, 0, 1, 1], [], []>} : vector<8x64xbf16>, vector<64x256xbf16>, vector<8x256xf32> -> vector<8x256xf32>
    %152 = arith.addf %149, %151 : vector<8x256xf32>
    %153 = arith.negf %152 : vector<8x256xf32>
    %154 = math.exp %153 : vector<8x256xf32>
    %cst_29 = arith.constant 1.000000e+00 : f32
    %155 = vector.broadcast %cst_29 : f32 to vector<8x256xf32>
    %156 = arith.addf %155, %154 : vector<8x256xf32>
    %157 = arith.divf %155, %156 : vector<8x256xf32>
    %158 = math.tanh %152 : vector<8x256xf32>
    %159 = vector.extract_strided_slice %157 {offsets = [0, 0], sizes = [8, 64], strides = [1, 1]} : vector<8x256xf32> to vector<8x64xf32>
    %160 = vector.extract_strided_slice %157 {offsets = [0, 64], sizes = [8, 64], strides = [1, 1]} : vector<8x256xf32> to vector<8x64xf32>
    %161 = vector.extract_strided_slice %158 {offsets = [0, 128], sizes = [8, 64], strides = [1, 1]} : vector<8x256xf32> to vector<8x64xf32>
    %162 = vector.extract_strided_slice %157 {offsets = [0, 192], sizes = [8, 64], strides = [1, 1]} : vector<8x256xf32> to vector<8x64xf32>
    %163 = arith.mulf %160, %148 : vector<8x64xf32>
    %164 = arith.mulf %159, %161 : vector<8x64xf32>
    %165 = arith.addf %163, %164 : vector<8x64xf32>
    %166 = math.tanh %165 : vector<8x64xf32>
    %167 = arith.mulf %162, %166 : vector<8x64xf32>
    %c5_i32 = arith.constant 5 : i32
    %168 = vector.broadcast %c5_i32 : i32 to vector<8x64xi32>
    %169 = arith.cmpi sgt, %30, %168 : vector<8x64xi32>
    %170 = arith.select %169, %167, %147 : vector<8x64xi1>, vector<8x64xf32>
    %171 = arith.select %169, %165, %148 : vector<8x64xi1>, vector<8x64xf32>
    %172 = vector.extract_strided_slice %20 {offsets = [48, 0], sizes = [8, 256], strides = [1, 1]} : vector<80x256xf32> to vector<8x256xf32>
    %173 = arith.truncf %170 : vector<8x64xf32> to vector<8x64xbf16>
    %cst_30 = arith.constant dense<0.000000e+00> : vector<8x256xf32>
    %174 = tpu.matmul %173, %31, %cst_30 {dimension_numbers = #tpu.dot_dimension_numbers<[1], [0], [0], [1], [0, 0, 1, 1], [], []>} : vector<8x64xbf16>, vector<64x256xbf16>, vector<8x256xf32> -> vector<8x256xf32>
    %175 = arith.addf %172, %174 : vector<8x256xf32>
    %176 = arith.negf %175 : vector<8x256xf32>
    %177 = math.exp %176 : vector<8x256xf32>
    %cst_31 = arith.constant 1.000000e+00 : f32
    %178 = vector.broadcast %cst_31 : f32 to vector<8x256xf32>
    %179 = arith.addf %178, %177 : vector<8x256xf32>
    %180 = arith.divf %178, %179 : vector<8x256xf32>
    %181 = math.tanh %175 : vector<8x256xf32>
    %182 = vector.extract_strided_slice %180 {offsets = [0, 0], sizes = [8, 64], strides = [1, 1]} : vector<8x256xf32> to vector<8x64xf32>
    %183 = vector.extract_strided_slice %180 {offsets = [0, 64], sizes = [8, 64], strides = [1, 1]} : vector<8x256xf32> to vector<8x64xf32>
    %184 = vector.extract_strided_slice %181 {offsets = [0, 128], sizes = [8, 64], strides = [1, 1]} : vector<8x256xf32> to vector<8x64xf32>
    %185 = vector.extract_strided_slice %180 {offsets = [0, 192], sizes = [8, 64], strides = [1, 1]} : vector<8x256xf32> to vector<8x64xf32>
    %186 = arith.mulf %183, %171 : vector<8x64xf32>
    %187 = arith.mulf %182, %184 : vector<8x64xf32>
    %188 = arith.addf %186, %187 : vector<8x64xf32>
    %189 = math.tanh %188 : vector<8x64xf32>
    %190 = arith.mulf %185, %189 : vector<8x64xf32>
    %c6_i32 = arith.constant 6 : i32
    %191 = vector.broadcast %c6_i32 : i32 to vector<8x64xi32>
    %192 = arith.cmpi sgt, %30, %191 : vector<8x64xi32>
    %193 = arith.select %192, %190, %170 : vector<8x64xi1>, vector<8x64xf32>
    %194 = arith.select %192, %188, %171 : vector<8x64xi1>, vector<8x64xf32>
    %195 = vector.extract_strided_slice %20 {offsets = [56, 0], sizes = [8, 256], strides = [1, 1]} : vector<80x256xf32> to vector<8x256xf32>
    %196 = arith.truncf %193 : vector<8x64xf32> to vector<8x64xbf16>
    %cst_32 = arith.constant dense<0.000000e+00> : vector<8x256xf32>
    %197 = tpu.matmul %196, %31, %cst_32 {dimension_numbers = #tpu.dot_dimension_numbers<[1], [0], [0], [1], [0, 0, 1, 1], [], []>} : vector<8x64xbf16>, vector<64x256xbf16>, vector<8x256xf32> -> vector<8x256xf32>
    %198 = arith.addf %195, %197 : vector<8x256xf32>
    %199 = arith.negf %198 : vector<8x256xf32>
    %200 = math.exp %199 : vector<8x256xf32>
    %cst_33 = arith.constant 1.000000e+00 : f32
    %201 = vector.broadcast %cst_33 : f32 to vector<8x256xf32>
    %202 = arith.addf %201, %200 : vector<8x256xf32>
    %203 = arith.divf %201, %202 : vector<8x256xf32>
    %204 = math.tanh %198 : vector<8x256xf32>
    %205 = vector.extract_strided_slice %203 {offsets = [0, 0], sizes = [8, 64], strides = [1, 1]} : vector<8x256xf32> to vector<8x64xf32>
    %206 = vector.extract_strided_slice %203 {offsets = [0, 64], sizes = [8, 64], strides = [1, 1]} : vector<8x256xf32> to vector<8x64xf32>
    %207 = vector.extract_strided_slice %204 {offsets = [0, 128], sizes = [8, 64], strides = [1, 1]} : vector<8x256xf32> to vector<8x64xf32>
    %208 = vector.extract_strided_slice %203 {offsets = [0, 192], sizes = [8, 64], strides = [1, 1]} : vector<8x256xf32> to vector<8x64xf32>
    %209 = arith.mulf %206, %194 : vector<8x64xf32>
    %210 = arith.mulf %205, %207 : vector<8x64xf32>
    %211 = arith.addf %209, %210 : vector<8x64xf32>
    %212 = math.tanh %211 : vector<8x64xf32>
    %213 = arith.mulf %208, %212 : vector<8x64xf32>
    %c7_i32 = arith.constant 7 : i32
    %214 = vector.broadcast %c7_i32 : i32 to vector<8x64xi32>
    %215 = arith.cmpi sgt, %30, %214 : vector<8x64xi32>
    %216 = arith.select %215, %213, %193 : vector<8x64xi1>, vector<8x64xf32>
    %217 = arith.select %215, %211, %194 : vector<8x64xi1>, vector<8x64xf32>
    %218 = vector.extract_strided_slice %20 {offsets = [64, 0], sizes = [8, 256], strides = [1, 1]} : vector<80x256xf32> to vector<8x256xf32>
    %219 = arith.truncf %216 : vector<8x64xf32> to vector<8x64xbf16>
    %cst_34 = arith.constant dense<0.000000e+00> : vector<8x256xf32>
    %220 = tpu.matmul %219, %31, %cst_34 {dimension_numbers = #tpu.dot_dimension_numbers<[1], [0], [0], [1], [0, 0, 1, 1], [], []>} : vector<8x64xbf16>, vector<64x256xbf16>, vector<8x256xf32> -> vector<8x256xf32>
    %221 = arith.addf %218, %220 : vector<8x256xf32>
    %222 = arith.negf %221 : vector<8x256xf32>
    %223 = math.exp %222 : vector<8x256xf32>
    %cst_35 = arith.constant 1.000000e+00 : f32
    %224 = vector.broadcast %cst_35 : f32 to vector<8x256xf32>
    %225 = arith.addf %224, %223 : vector<8x256xf32>
    %226 = arith.divf %224, %225 : vector<8x256xf32>
    %227 = math.tanh %221 : vector<8x256xf32>
    %228 = vector.extract_strided_slice %226 {offsets = [0, 0], sizes = [8, 64], strides = [1, 1]} : vector<8x256xf32> to vector<8x64xf32>
    %229 = vector.extract_strided_slice %226 {offsets = [0, 64], sizes = [8, 64], strides = [1, 1]} : vector<8x256xf32> to vector<8x64xf32>
    %230 = vector.extract_strided_slice %227 {offsets = [0, 128], sizes = [8, 64], strides = [1, 1]} : vector<8x256xf32> to vector<8x64xf32>
    %231 = vector.extract_strided_slice %226 {offsets = [0, 192], sizes = [8, 64], strides = [1, 1]} : vector<8x256xf32> to vector<8x64xf32>
    %232 = arith.mulf %229, %217 : vector<8x64xf32>
    %233 = arith.mulf %228, %230 : vector<8x64xf32>
    %234 = arith.addf %232, %233 : vector<8x64xf32>
    %235 = math.tanh %234 : vector<8x64xf32>
    %236 = arith.mulf %231, %235 : vector<8x64xf32>
    %c8_i32 = arith.constant 8 : i32
    %237 = vector.broadcast %c8_i32 : i32 to vector<8x64xi32>
    %238 = arith.cmpi sgt, %30, %237 : vector<8x64xi32>
    %239 = arith.select %238, %236, %216 : vector<8x64xi1>, vector<8x64xf32>
    %240 = arith.select %238, %234, %217 : vector<8x64xi1>, vector<8x64xf32>
    %241 = vector.extract_strided_slice %20 {offsets = [72, 0], sizes = [8, 256], strides = [1, 1]} : vector<80x256xf32> to vector<8x256xf32>
    %242 = arith.truncf %239 : vector<8x64xf32> to vector<8x64xbf16>
    %cst_36 = arith.constant dense<0.000000e+00> : vector<8x256xf32>
    %243 = tpu.matmul %242, %31, %cst_36 {dimension_numbers = #tpu.dot_dimension_numbers<[1], [0], [0], [1], [0, 0, 1, 1], [], []>} : vector<8x64xbf16>, vector<64x256xbf16>, vector<8x256xf32> -> vector<8x256xf32>
    %244 = arith.addf %241, %243 : vector<8x256xf32>
    %245 = arith.negf %244 : vector<8x256xf32>
    %246 = math.exp %245 : vector<8x256xf32>
    %cst_37 = arith.constant 1.000000e+00 : f32
    %247 = vector.broadcast %cst_37 : f32 to vector<8x256xf32>
    %248 = arith.addf %247, %246 : vector<8x256xf32>
    %249 = arith.divf %247, %248 : vector<8x256xf32>
    %250 = math.tanh %244 : vector<8x256xf32>
    %251 = vector.extract_strided_slice %249 {offsets = [0, 0], sizes = [8, 64], strides = [1, 1]} : vector<8x256xf32> to vector<8x64xf32>
    %252 = vector.extract_strided_slice %249 {offsets = [0, 64], sizes = [8, 64], strides = [1, 1]} : vector<8x256xf32> to vector<8x64xf32>
    %253 = vector.extract_strided_slice %250 {offsets = [0, 128], sizes = [8, 64], strides = [1, 1]} : vector<8x256xf32> to vector<8x64xf32>
    %254 = vector.extract_strided_slice %249 {offsets = [0, 192], sizes = [8, 64], strides = [1, 1]} : vector<8x256xf32> to vector<8x64xf32>
    %255 = arith.mulf %252, %240 : vector<8x64xf32>
    %256 = arith.mulf %251, %253 : vector<8x64xf32>
    %257 = arith.addf %255, %256 : vector<8x64xf32>
    %258 = math.tanh %257 : vector<8x64xf32>
    %259 = arith.mulf %254, %258 : vector<8x64xf32>
    %c9_i32 = arith.constant 9 : i32
    %260 = vector.broadcast %c9_i32 : i32 to vector<8x64xi32>
    %261 = arith.cmpi sgt, %30, %260 : vector<8x64xi32>
    %262 = arith.select %261, %259, %239 : vector<8x64xi1>, vector<8x64xf32>
    %c0_38 = arith.constant 0 : index
    %c0_39 = arith.constant 0 : index
    %263 = vector.load %arg9[%c0_38, %c0_39] : memref<2x90xf32, #tpu.memory_space<vmem>>, vector<2x90xf32>
    %264 = arith.truncf %263 : vector<2x90xf32> to vector<2x90xbf16>
    %c0_40 = arith.constant 0 : index
    %c0_41 = arith.constant 0 : index
    %265 = vector.load %arg10[%c0_40, %c0_41] : memref<90x64xbf16, #tpu.memory_space<vmem>>, vector<90x64xbf16>
    %cst_42 = arith.constant dense<0.000000e+00> : vector<2x64xf32>
    %266 = tpu.matmul %264, %265, %cst_42 {dimension_numbers = #tpu.dot_dimension_numbers<[1], [0], [0], [1], [0, 0, 1, 1], [], []>} : vector<2x90xbf16>, vector<90x64xbf16>, vector<2x64xf32> -> vector<2x64xf32>
    %c0_43 = arith.constant 0 : index
    %c0_44 = arith.constant 0 : index
    %267 = vector.load %arg11[%c0_43, %c0_44] : memref<1x64xf32, #tpu.memory_space<vmem>>, vector<1x64xf32>
    %268 = vector.broadcast %267 : vector<1x64xf32> to vector<2x64xf32>
    %269 = arith.addf %266, %268 : vector<2x64xf32>
    %cst_45 = arith.constant 0.000000e+00 : f32
    %270 = vector.broadcast %cst_45 : f32 to vector<2x64xf32>
    %271 = arith.maximumf %269, %270 : vector<2x64xf32>
    %272 = arith.truncf %271 : vector<2x64xf32> to vector<2x64xbf16>
    %c0_46 = arith.constant 0 : index
    %c0_47 = arith.constant 0 : index
    %273 = vector.load %arg12[%c0_46, %c0_47] : memref<64x64xbf16, #tpu.memory_space<vmem>>, vector<64x64xbf16>
    %cst_48 = arith.constant dense<0.000000e+00> : vector<2x64xf32>
    %274 = tpu.matmul %272, %273, %cst_48 {dimension_numbers = #tpu.dot_dimension_numbers<[1], [0], [0], [1], [0, 0, 1, 1], [], []>} : vector<2x64xbf16>, vector<64x64xbf16>, vector<2x64xf32> -> vector<2x64xf32>
    %c0_49 = arith.constant 0 : index
    %c0_50 = arith.constant 0 : index
    %275 = vector.load %arg13[%c0_49, %c0_50] : memref<1x64xf32, #tpu.memory_space<vmem>>, vector<1x64xf32>
    %276 = vector.broadcast %275 : vector<1x64xf32> to vector<2x64xf32>
    %277 = arith.addf %274, %276 : vector<2x64xf32>
    %c0_51 = arith.constant 0 : index
    %c0_52 = arith.constant 0 : index
    %278 = vector.load %arg8[%c0_51, %c0_52] : memref<8x1xi32, #tpu.memory_space<vmem>>, vector<8x1xi32>
    %cst_53 = arith.constant 0.000000e+00 : f32
    %279 = vector.broadcast %cst_53 : f32 to vector<8x64xf32>
    %c0_i32_54 = arith.constant 0 : i32
    %280 = vector.broadcast %c0_i32_54 : i32 to vector<8x1xi32>
    %281 = arith.cmpi eq, %278, %280 : vector<8x1xi32>
    %282 = vector.extract_strided_slice %277 {offsets = [0, 0], sizes = [1, 64], strides = [1, 1]} : vector<2x64xf32> to vector<1x64xf32>
    %283 = vector.shape_cast %281 : vector<8x1xi1> to vector<8x1xi1>
    %284 = vector.broadcast %283 : vector<8x1xi1> to vector<8x64xi1>
    %285 = vector.shape_cast %282 : vector<1x64xf32> to vector<1x64xf32>
    %286 = vector.broadcast %285 : vector<1x64xf32> to vector<8x64xf32>
    %287 = arith.select %284, %286, %279 : vector<8x64xi1>, vector<8x64xf32>
    %c1_i32_55 = arith.constant 1 : i32
    %288 = vector.broadcast %c1_i32_55 : i32 to vector<8x1xi32>
    %289 = arith.cmpi eq, %278, %288 : vector<8x1xi32>
    %290 = vector.extract_strided_slice %277 {offsets = [1, 0], sizes = [1, 64], strides = [1, 1]} : vector<2x64xf32> to vector<1x64xf32>
    %291 = vector.shape_cast %289 : vector<8x1xi1> to vector<8x1xi1>
    %292 = vector.broadcast %291 : vector<8x1xi1> to vector<8x64xi1>
    %293 = vector.shape_cast %290 : vector<1x64xf32> to vector<1x64xf32>
    %294 = vector.broadcast %293 : vector<1x64xf32> to vector<8x64xf32>
    %295 = arith.select %292, %294, %287 : vector<8x64xi1>, vector<8x64xf32>
    %296 = arith.truncf %262 : vector<8x64xf32> to vector<8x64xbf16>
    %c0_56 = arith.constant 0 : index
    %c0_57 = arith.constant 0 : index
    %297 = vector.load %arg14[%c0_56, %c0_57] : memref<64x64xbf16, #tpu.memory_space<vmem>>, vector<64x64xbf16>
    %cst_58 = arith.constant dense<0.000000e+00> : vector<8x64xf32>
    %298 = tpu.matmul %296, %297, %cst_58 {dimension_numbers = #tpu.dot_dimension_numbers<[1], [0], [0], [1], [0, 0, 1, 1], [], []>} : vector<8x64xbf16>, vector<64x64xbf16>, vector<8x64xf32> -> vector<8x64xf32>
    %299 = arith.truncf %295 : vector<8x64xf32> to vector<8x64xbf16>
    %c0_59 = arith.constant 0 : index
    %c0_60 = arith.constant 0 : index
    %300 = vector.load %arg15[%c0_59, %c0_60] : memref<64x64xbf16, #tpu.memory_space<vmem>>, vector<64x64xbf16>
    %cst_61 = arith.constant dense<0.000000e+00> : vector<8x64xf32>
    %301 = tpu.matmul %299, %300, %cst_61 {dimension_numbers = #tpu.dot_dimension_numbers<[1], [0], [0], [1], [0, 0, 1, 1], [], []>} : vector<8x64xbf16>, vector<64x64xbf16>, vector<8x64xf32> -> vector<8x64xf32>
    %302 = arith.addf %298, %301 : vector<8x64xf32>
    %c0_62 = arith.constant 0 : index
    %c0_63 = arith.constant 0 : index
    %303 = vector.load %arg16[%c0_62, %c0_63] : memref<1x64xf32, #tpu.memory_space<vmem>>, vector<1x64xf32>
    %304 = vector.broadcast %303 : vector<1x64xf32> to vector<8x64xf32>
    %305 = arith.addf %302, %304 : vector<8x64xf32>
    %c0_64 = arith.constant 0 : index
    %c0_65 = arith.constant 0 : index
    %306 = vector.load %arg17[%c0_64, %c0_65] : memref<8x64xf32, #tpu.memory_space<vmem>>, vector<8x64xf32>
    tpu.vector_store %arg17[%c0_64, %c0_65], %305 {strides = array<i32>} : memref<8x64xf32, #tpu.memory_space<vmem>>, vector<8x64xf32>,
    return
  }
}

</mosaic_0001>

<bundles_post_ra>
// kernel: char_and_prop_sig_io_encoder.1
= control target key start
LH: loop header
LB: loop body
LE: loop exit
PB: predicated region body
PF: predicated region fallthrough
CT: control target
= control target key end

     0   :  { %s3181_s0 = inlined_call_operand.vmem [shape: s32[80,1], index: 0, kind: input, shape index: {}]   ;;  %s3182_s1 = inlined_call_operand.vmem [shape: s32[80,1], index: 1, kind: input, shape index: {}]   ;;  %s3183_s2 = inlined_call_operand.vmem [shape: s32[8,1], index: 2, kind: input, shape index: {}]   ;;  %s3184_s3 = inlined_call_operand.vmem [shape: s32[8,1], index: 3, kind: input, shape index: {}]   ;;  %s3185_s4 = inlined_call_operand.vmem [shape: bf16[128,256], index: 4, kind: input, shape index: {}]   ;;  %s3186_s5 = inlined_call_operand.vmem [shape: bf16[128,256], index: 5, kind: input, shape index: {}]   ;;  %s3187_s6 = inlined_call_operand.vmem [shape: bf16[64,256], index: 6, kind: input, shape index: {}]   ;;  %s3188_s7 = inlined_call_operand.vmem [shape: f32[1,256], index: 7, kind: input, shape index: {}]   ;;  %s3189_s8 = inlined_call_operand.vmem [shape: s32[8,1], index: 8, kind: input, shape index: {}]   ;;  %s3190_s9 = inlined_call_operand.vmem [shape: f32[2,90], index: 9, kind: input, shape index: {}]   ;;  %s3191_s10 = inlined_call_operand.vmem [shape: bf16[90,64], index: 10, kind: input, shape index: {}]   ;;  %s3192_s11 = inlined_call_operand.vmem [shape: f32[1,64], index: 11, kind: input, shape index: {}]   ;;  %s3193_s12 = inlined_call_operand.hbm [shape: bf16[64,64], index: 12, kind: input, shape index: {}]   ;;  %s3194_s13 = inlined_call_operand.vmem [shape: f32[1,64], index: 13, kind: input, shape index: {}]   ;;  %s3195_s14 = inlined_call_operand.hbm [shape: bf16[64,64], index: 14, kind: input, shape index: {}]   ;;  %s3196_s15 = inlined_call_operand.hbm [shape: bf16[64,64], index: 15, kind: input, shape index: {}]   ;;  %s3197_s16 = inlined_call_operand.vmem [shape: f32[1,64], index: 16, kind: input, shape index: {}]   ;;  %s3198_s17 = inlined_call_operand.hbm [shape: f32[8,64], index: 17, kind: output, shape index: {}]  }
   0x1   :  { %3201 = sst [smem:[#allocation12_spill]] %s3181_s0 }
   0x2   :  { %3202 = sst [smem:[#allocation13_spill]] %s3182_s1 }
   0x3   :  { %22 = vsyncpa [#allocation3], 0 }
   0x4   :  { %23 = vsyncpa [#allocation6], 0 }
   0x5   :  { %24 = vsyncpa [#allocation4], 0  ;;  %s2457_s24 = smov [#allocation5]   ;;  %s2458_s26 = smov [#allocation2]  }
   0x6   :  { %s68_s25 = sshll.u32 %s2457_s24, 4  ;;  %s54_s27 = sshll.u32 %s2458_s26, 4  ;;  %s69_s25 = int_to_ptr.vmem [resolvable:$true] %s68_s25  ;;  %s2557_s27 = int_to_ptr.vmem [resolvable:$true] %s54_s27 }
   0x7   :  { %s2363_s0 = scalar_lea.hbm %s3195_s14, 512 }
   0x8   :  { %p2364_p0 = scmp.ne.s32.totalorder %s3195_s14, %s2363_s0  ;;  %p2367_p1 = scmp.lt.u32.totalorder %s2363_s0, %s3195_s14 }
   0xa   :  { %p2369_p2 = pnand %p2367_p1, %p2364_p0 }
   0xc   :  { %2372 = shalt.err (!%p2369_p2)
}
   0xd   :  { %s2373_s20 = scalar_lea.vmem %s69_s25, 512  ;;  %p2378_p4 = scmp.lt.s32.totalorder %s69_s25, %s69_s25 }
   0xe   :  { %p2374_p3 = scmp.ne.s32.totalorder %s69_s25, %s2373_s20  ;;  %p2379_p5 = scmp.lt.s32.totalorder %s2373_s20, %s2373_s20 }
  0x10   :  { %p2380_p6 = por %p2379_p5, %p2378_p4 }
  0x12   :  { %p2381_p7 = pnand %p2380_p6, %p2374_p3 }
  0x14   :  { %2384 = shalt.err (!%p2381_p7)
}
  0x15   :  { %s2459_s21 = smov 64   ;;  %s2460_s22 = smov 4  }
  0x16   :  { %74 = dma.hbm_to_vmem [thread:$0]  %s3195_s14, 512, %s69_s25, [#allocation6], %s2459_s21, %s2459_s21, %s2460_s22  }
  0x17   :  { %s2385_s29 = scalar_lea.hbm %s3193_s12, 512 }
  0x18   :  { %p2386_p8 = scmp.ne.s32.totalorder %s3193_s12, %s2385_s29  ;;  %p2389_p9 = scmp.lt.u32.totalorder %s2385_s29, %s3193_s12 }
  0x1a   :  { %p2391_p10 = pnand %p2389_p9, %p2386_p8 }
  0x1c   :  { %2394 = shalt.err (!%p2391_p10)
}
  0x1d   :  { %s2395_s1 = scalar_lea.vmem %s2557_s27, 512  ;;  %p2400_p12 = scmp.lt.s32.totalorder %s2557_s27, %s2557_s27 }
  0x1e   :  { %p2396_p11 = scmp.ne.s32.totalorder %s2557_s27, %s2395_s1  ;;  %p2401_p13 = scmp.lt.s32.totalorder %s2395_s1, %s2395_s1 }
  0x20   :  { %p2402_p0 = por %p2401_p13, %p2400_p12 }
  0x22   :  { %p2403_p1 = pnand %p2402_p0, %p2396_p11 }
  0x24   :  { %2406 = shalt.err (!%p2403_p1)
}
  0x25   :  { %60 = dma.hbm_to_vmem [thread:$0]  %s3193_s12, 512, %s2557_s27, [#allocation3], %s2459_s21, %s2459_s21, %s2460_s22  }
  0x26   :  { %s2461_s20 = smov [#allocation7]   ;;  %s2407_s28 = scalar_lea.hbm %s3196_s15, 512 }
  0x27   :  { %s80_s23 = sshll.u32 %s2461_s20, 4  ;;  %p2408_p2 = scmp.ne.s32.totalorder %s3196_s15, %s2407_s28  ;;  %s81_s23 = int_to_ptr.vmem [resolvable:$true] %s80_s23 }
  0x28   :  { %p2411_p3 = scmp.lt.u32.totalorder %s2407_s28, %s3196_s15 }
  0x2a   :  { %p2413_p4 = pnand %p2411_p3, %p2408_p2 }
  0x2c   :  { %2416 = shalt.err (!%p2413_p4)
}
  0x2d   :  { %s2417_s19 = scalar_lea.vmem %s81_s23, 512  ;;  %p2422_p6 = scmp.lt.s32.totalorder %s81_s23, %s81_s23 }
  0x2e   :  { %p2418_p5 = scmp.ne.s32.totalorder %s81_s23, %s2417_s19  ;;  %p2423_p7 = scmp.lt.s32.totalorder %s2417_s19, %s2417_s19 }
  0x30   :  { %p2424_p8 = por %p2423_p7, %p2422_p6 }
  0x32   :  { %p2425_p9 = pnand %p2424_p8, %p2418_p5 }
  0x34   :  { %2428 = shalt.err (!%p2425_p9)
}
  0x35   :  { %86 = dma.hbm_to_vmem [thread:$0]  %s3196_s15, 512, %s81_s23, [#allocation6], %s2459_s21, %s2459_s21, %s2460_s22  }
  0x36   :  { %2451 = dma.done.wait [#allocation3], 512  }
  0x37   :  { %2452 = vsyncadd [#allocation3], 4294966784 }
  0x38   :  { %2453 = dma.done.wait [#allocation6], 1024  }
  0x39   :  { %2454 = vsyncadd [#allocation6], 4294966272  ;;  %v2462_v0 = vmov 0   ;;  %s3203_s25 = sld [smem:[#allocation13_spill]]  ;;  %v2158_v6 = vld [vmem:[%s3186_s5 + $0x4] ss:$8 sps:$4 sm:$0xff]   ;;  %v119_v39 = vlaneseq }
  0x3a   :  { %2157 = vset.pattern.permute.xlu1 %v2462_v0  ;;  %2156 = vset.pattern.permute.xlu0 %v2462_v0  ;;  %v2160_v7 = vld [vmem:[%s3186_s5] ss:$8 sps:$4 sm:$0xff]   ;;  %v2161_v9 = vld [vmem:[%s3186_s5 + $0x14] ss:$8 sps:$4 sm:$0xff]   ;;  %v2163_v10 = vld [vmem:[%s3186_s5 + $0x10] ss:$8 sps:$4 sm:$0xff]  }
  0x3b   :  { %395 = vmatprep.mubr.bf16.mxu0 %v2462_v0  ;;  %735 = vmatprep.mubr.bf16.mxu1 %v2462_v0  ;;  %v2164_v13 = vld [vmem:[%s3186_s5 + $0x24] ss:$8 sps:$4 sm:$0xff]   ;;  %v2166_v14 = vld [vmem:[%s3186_s5 + $0x20] ss:$8 sps:$4 sm:$0xff]   ;;  %v2167_v17 = vld [vmem:[%s3186_s5 + $0x34] ss:$8 sps:$4 sm:$0xff]  }
  0x3c   :  { %363 = vmatprep.subr.bf16.mxu0 %v2158_v6  ;;  %v2169_v18 = vld [vmem:[%s3186_s5 + $0x30] ss:$8 sps:$4 sm:$0xff]   ;;  %s3204_s23 = sld [smem:[#allocation12_spill]]  ;;  %v2170_v21 = vld [vmem:[%s3186_s5 + $0x44] ss:$8 sps:$4 sm:$0xff]   ;;  %v2763_v41 = vand.u32 127, %v119_v39 }
  0x3d   :  { %364 = vmatpush1.bf16.msra.mxu0 %v2160_v7  ;;  %v2172_v22 = vld [vmem:[%s3186_s5 + $0x40] ss:$8 sps:$4 sm:$0xff]   ;;  %v2173_v23 = vld [vmem:[%s3186_s5 + $0x54] ss:$8 sps:$4 sm:$0xff]   ;;  %v2175_v25 = vld [vmem:[%s3186_s5 + $0x50] ss:$8 sps:$4 sm:$0xff]  }
  0x3e   :  { %365 = vmatprep.subr.bf16.mxu0 %v2161_v9  ;;  %v642_v24 = vld [vmem:[%s3183_s2] sm:$0xff]  ;;  %v2179_v29 = vld [vmem:[%s3186_s5 + $0x74] ss:$8 sps:$4 sm:$0xff]   ;;  %v2181_v31 = vld [vmem:[%s3186_s5 + $0x70] ss:$8 sps:$4 sm:$0xff]   ;;  %s2466_s26 = smov [#allocation8]  }
  0x3f   :  { %v111_v1 = vld [vmem:[%s3203_s25 + $0x10] sm:$0xff]  ;;  %v109_v2 = vld [vmem:[%s3203_s25] sm:$0xff]  ;;  %v112_v3 = vld [vmem:[%s3203_s25 + $0x18] sm:$0xff]  ;;  %v2463_v46 = vmov 1.0|1.0   ;;  %s1908_s28 = sshll.u32 %s2466_s26, 4  ;;  %s1909_s28 = int_to_ptr.vmem [resolvable:$true] %s1908_s28 }
  0x40   :  { %193 = vperm.xlu1 %2157, %v111_v1   ;;  %187 = vperm.xlu0 %2156, %v109_v2   ;;  %v110_v4 = vld [vmem:[%s3203_s25 + $0x8] sm:$0xff]  ;;  %v113_v8 = vld [vmem:[%s3203_s25 + $0x20] sm:$0xff]  ;;  %v116_v11 = vld [vmem:[%s3203_s25 + $0x38] sm:$0xff]  ;;  %s2429_s2 = scalar_lea.vmem %s1909_s28, 128  ;;  %p2434_p11 = scmp.lt.s32.totalorder %s1909_s28, %s1909_s28 }
  0x41   :  { %v114_v5 = vld [vmem:[%s3203_s25 + $0x28] sm:$0xff]  ;;  %v115_v12 = vld [vmem:[%s3203_s25 + $0x30] sm:$0xff]  ;;  %366 = vmatpush1.bf16.msra.mxu0 %v2163_v10  ;;  %v117_v16 = vld [vmem:[%s3203_s25 + $0x40] sm:$0xff]  ;;  %v2844_v10 = vshrl.u32 %v119_v39, 7  ;;  %p2430_p10 = scmp.ne.s32.totalorder %s1909_s28, %s2429_s2  ;;  %p2435_p12 = scmp.lt.s32.totalorder %s2429_s2, %s2429_s2 }
  0x42   :  { %v118_v15 = vld [vmem:[%s3203_s25 + $0x48] sm:$0xff]  ;;  %367 = vmatprep.subr.bf16.mxu0 %v2164_v13  ;;  %v99_v20 = vld [vmem:[%s3204_s23] sm:$0xff]  ;;  %v2715_v32 = vld [vmem:[%s3187_s6 + $0x14] ss:$8 sps:$4 sm:$0xff]  }
  0x43   :  { %v100_v19 = vld [vmem:[%s3204_s23 + $0x8] sm:$0xff]  ;;  %v2723_v34 = vld [vmem:[%s3187_s6 + $0x10] ss:$8 sps:$4 sm:$0xff]   ;;  %v2742_v37 = vld [vmem:[%s3187_s6 + $0x34] ss:$8 sps:$4 sm:$0xff]   ;;  %v617_v13 = vsub.s32 1, %v2844_v10  ;;  %p2436_p13 = por %p2435_p12, %p2434_p11 }
  0x44   :  { %196 = vperm.xlu1 %2157, %v112_v3   ;;  %190 = vperm.xlu0 %2156, %v110_v4   ;;  %v2176_v26 = vld [vmem:[%s3186_s5 + $0x64] ss:$8 sps:$4 sm:$0xff]   ;;  %v2178_v28 = vld [vmem:[%s3186_s5 + $0x60] ss:$8 sps:$4 sm:$0xff]   ;;  %v2747_v38 = vld [vmem:[%s3187_s6 + $0x30] ss:$8 sps:$4 sm:$0xff]  }
  0x45   :  { %368 = vmatpush1.bf16.msra.mxu0 %v2166_v14  ;;  %v2694_v27 = vld [vmem:[%s3187_s6 + $0x4] ss:$8 sps:$4 sm:$0xff]   ;;  %v2706_v30 = vld [vmem:[%s3187_s6] ss:$8 sps:$4 sm:$0xff]   ;;  %v2187_v45 = vld [vmem:[%s3185_s4 + $0x14] ss:$8 sps:$4 sm:$0xff]   ;;  %p2437_p0 = pnand %p2436_p13, %p2430_p10 }
  0x46   :  { %369 = vmatprep.subr.bf16.mxu0 %v2167_v17  ;;  %703 = vmatprep.subr.bf16.mxu1 %v2694_v27  ;;  %v2184_v33 = vld [vmem:[%s3185_s4 + $0x4] ss:$8 sps:$4 sm:$0xff]   ;;  %v2736_v36 = vld [vmem:[%s3187_s6 + $0x20] ss:$8 sps:$4 sm:$0xff]   ;;  %v2185_v47 = vld [vmem:[%s3185_s4 + $0x10] ss:$8 sps:$4 sm:$0xff]  }
  0x47   :  { %704 = vmatpush1.bf16.msra.mxu1 %v2706_v30  ;;  %v2729_v35 = vld [vmem:[%s3187_s6 + $0x24] ss:$8 sps:$4 sm:$0xff]   ;;  %v2182_v44 = vld [vmem:[%s3185_s4] ss:$8 sps:$4 sm:$0xff]   ;;  %v2193_v51 = vld [vmem:[%s3185_s4 + $0x34] ss:$8 sps:$4 sm:$0xff]  }
  0x48   :  { %202 = vperm.xlu1 %2157, %v114_v5   ;;  %199 = vperm.xlu0 %2156, %v113_v8   ;;  %v2190_v48 = vld [vmem:[%s3185_s4 + $0x24] ss:$8 sps:$4 sm:$0xff]   ;;  %v2188_v50 = vld [vmem:[%s3185_s4 + $0x20] ss:$8 sps:$4 sm:$0xff]   ;;  %v2191_v54 = vld [vmem:[%s3185_s4 + $0x30] ss:$8 sps:$4 sm:$0xff]  }
  0x49   :  { %370 = vmatpush1.bf16.msra.mxu0 %v2169_v18  ;;  %705 = vmatprep.subr.bf16.mxu1 %v2715_v32  ;;  %v2196_v55 = vld [vmem:[%s3185_s4 + $0x44] ss:$8 sps:$4 sm:$0xff]   ;;  %v2194_v56 = vld [vmem:[%s3185_s4 + $0x40] ss:$8 sps:$4 sm:$0xff]   ;;  %v2201_v57 = vld [vmem:[%s3185_s4 + $0x54] ss:$8 sps:$4 sm:$0xff]  }
  0x4a   :  { %371 = vmatprep.subr.bf16.mxu0 %v2170_v21  ;;  %v2199_v60 = vld [vmem:[%s3185_s4 + $0x50] ss:$8 sps:$4 sm:$0xff]   ;;  %v2208_v61 = vld [vmem:[%s3185_s4 + $0x64] ss:$8 sps:$4 sm:$0xff]   ;;  %v2206_v62 = vld [vmem:[%s3185_s4 + $0x60] ss:$8 sps:$4 sm:$0xff]  }
  0x4b   :  { %706 = vmatpush1.bf16.msra.mxu1 %v2723_v34  ;;  %v2214_v63 = vld [vmem:[%s3185_s4 + $0x74] ss:$8 sps:$4 sm:$0xff]   ;;  %v2212_v3 = vld [vmem:[%s3185_s4 + $0x70] ss:$8 sps:$4 sm:$0xff]  }
  0x4c   :  { %208 = vperm.xlu1 %2157, %v116_v11   ;;  %205 = vperm.xlu0 %2156, %v115_v12   ;;  %v613_v11 = vsub.s32 0, %v2844_v10  ;;  %v609_v12 = vld [vmem:[%s3188_s7] sm:$0x3] }
  0x4d   :  { %372 = vmatpush1.bf16.msra.mxu0 %v2172_v22  ;;  %707 = vmatprep.subr.bf16.mxu1 %v2729_v35 }
  0x4e   :  { %373 = vmatprep.subr.bf16.mxu0 %v2173_v23  ;;  %v2853_v14 = vrot.slane %v609_v12, %v613_v11 }
  0x4f   :  { %708 = vmatpush1.bf16.msra.mxu1 %v2736_v36 }
  0x50   :  { %214 = vperm.xlu1 %2157, %v118_v15   ;;  %211 = vperm.xlu0 %2156, %v117_v16   ;;  %v2857_v15 = vrot.slane %v609_v12, %v617_v13  ;;  %v102_v12 = vld [vmem:[%s3204_s23 + $0x18] sm:$0xff] }
  0x51   :  { %374 = vmatpush1.bf16.msra.mxu0 %v2175_v25  ;;  %709 = vmatprep.subr.bf16.mxu1 %v2742_v37 }
  0x52   :  { %375 = vmatprep.subr.bf16.mxu0 %v2176_v26 }
  0x53   :  { %710 = vmatpush1.bf16.msra.mxu1 %v2747_v38 }
  0x54   :  { %125 = vperm.xlu1 %2157, %v100_v19   ;;  %122 = vperm.xlu0 %2156, %v99_v20  }
  0x55   :  { %376 = vmatpush1.bf16.msra.mxu0 %v2178_v28  ;;  %783 = vmatprep.subr.bf16.mxu1 %v2694_v27 }
  0x56   :  { %377 = vmatprep.subr.bf16.mxu0 %v2179_v29  ;;  %736 = vmatmul.mubr.bf16.vlgmr.msra.gmra.mrb[0].mxu1 %v2462_v0 }
  0x57   :  { %784 = vmatpush1.bf16.msra.mxu1 %v2706_v30  ;;  %815 = vmatprep.mubr.bf16.mxu1 %v2462_v0 }
  0x58   :  { %645 = vperm.xlu1 %2157, %v642_v24   ;;  %785 = vmatprep.subr.bf16.mxu1 %v2715_v32 }
  0x59   :  { %378 = vmatpush1.bf16.msra.mxu0 %v2181_v31 }
  0x5a   :  { %526 = vmatprep.subr.bf16.mxu0 %v2184_v33  ;;  %v643_v33 = vld [vmem:[%s3184_s3] sm:$0xff] }
  0x5b   :  { %786 = vmatpush1.bf16.msra.mxu1 %v2723_v34 }
  0x5c   :  { %787 = vmatprep.subr.bf16.mxu1 %v2729_v35 }
  0x5f   :  { %788 = vmatpush1.bf16.msra.mxu1 %v2736_v36 }
  0x60   :  { %789 = vmatprep.subr.bf16.mxu1 %v2742_v37 }
  0x63   :  { %790 = vmatpush1.bf16.msra.mxu1 %v2747_v38 }
  0x64   :  { %867 = vmatprep.subr.bf16.mxu1 %v2694_v27 }
  0xbf   :  { %v188_v40 = vpop.permute.xlu0 %187  ;;  %v194_v43 = vpop.permute.xlu1 %193 }
  0xc0   :  { %vm216_vm1 = vcmp.eq.s32.totalorder %v2763_v41, %v188_v40  ;;  %vm218_vm3 = vcmp.eq.s32.totalorder %v2763_v41, %v194_v43 }
  0xc3   :  { %v191_v42 = vpop.permute.xlu0 %190  ;;  %v197_v49 = vpop.permute.xlu1 %196 }
  0xc4   :  { %vm217_vm0 = vcmp.eq.s32.totalorder %v2763_v41, %v191_v42  ;;  %vm219_vm4 = vcmp.eq.s32.totalorder %v2763_v41, %v197_v49 }
  0xc5   :  { %vm1954_vm2 = vmpackc.low %vm217_vm0, %vm216_vm1 }
  0xc6   :  { %1955 = vmatmul.mubr.msk.bf16.vlgmr.msra.gmra.mrb[0].mxu0 %vm1954_vm2, %v2463_v46  ;;  %vm1956_vm5 = vmpackc.low %vm219_vm4, %vm218_vm3  ;;  %vm641_vm2 = vcmp.lt.s32.totalorder %v2763_v41, 32  ;;  %vm699_vm4 = vcmask 523264  }
  0xc7   :  { %527 = vmatpush1.bf16.msra.mxu0 %v2182_v44  ;;  %405 = vmatprep.mubr.bf16.mxu0 %v2462_v0  ;;  %v203_v52 = vpop.permute.xlu1 %202  ;;  %v200_v53 = vpop.permute.xlu0 %199 }
  0xc8   :  { %528 = vmatprep.subr.bf16.mxu0 %v2187_v45  ;;  %vm221_vm6 = vcmp.eq.s32.totalorder %v2763_v41, %v203_v52  ;;  %vm220_vm7 = vcmp.eq.s32.totalorder %v2763_v41, %v200_v53 }
  0xc9   :  { %vm1958_vm8 = vmpackc.low %vm221_vm6, %vm220_vm7 }
  0xcb   :  { %529 = vmatpush1.bf16.msra.mxu0 %v2185_v47  ;;  %v209_v58 = vpop.permute.xlu1 %208  ;;  %v206_v59 = vpop.permute.xlu0 %205 }
  0xcc   :  { %530 = vmatprep.subr.bf16.mxu0 %v2190_v48  ;;  %vm223_vm9 = vcmp.eq.s32.totalorder %v2763_v41, %v209_v58  ;;  %vm222_vm10 = vcmp.eq.s32.totalorder %v2763_v41, %v206_v59 }
  0xcd   :  { %vm1960_vm11 = vmpackc.low %vm223_vm9, %vm222_vm10 }
  0xce   :  { %1957 = vmatmul.mubr.msk.bf16.gmra.mrb[4].mxu0 %vm1956_vm5, %v2463_v46 }
  0xcf   :  { %531 = vmatpush1.bf16.msra.mxu0 %v2188_v50  ;;  %415 = vmatprep.mubr.bf16.mxu0 %v2462_v0  ;;  %v215_v1 = vpop.permute.xlu1 %214  ;;  %v212_v2 = vpop.permute.xlu0 %211 }
  0xd0   :  { %532 = vmatprep.subr.bf16.mxu0 %v2193_v51  ;;  %vm225_vm12 = vcmp.eq.s32.totalorder %v2763_v41, %v215_v1  ;;  %vm224_vm13 = vcmp.eq.s32.totalorder %v2763_v41, %v212_v2 }
  0xd1   :  { %vm1962_vm14 = vmpackc.low %vm225_vm12, %vm224_vm13 }
  0xd3   :  { %533 = vmatpush1.bf16.msra.mxu0 %v2191_v54  ;;  %v126_v4 = vpop.permute.xlu1 %125  ;;  %v123_v5 = vpop.permute.xlu0 %122 }
  0xd4   :  { %534 = vmatprep.subr.bf16.mxu0 %v2196_v55  ;;  %vm152_vm15 = vcmp.eq.s32.totalorder %v2763_v41, %v126_v4  ;;  %vm151_vm0 = vcmp.eq.s32.totalorder %v2763_v41, %v123_v5  ;;  %v101_v55 = vld [vmem:[%s3204_s23 + $0x10] sm:$0xff] }
  0xd5   :  { %vm1980_vm1 = vmpackc.low %vm152_vm15, %vm151_vm0 }
  0xd6   :  { %1959 = vmatmul.mubr.msk.bf16.gmra.mrb[8].mxu0 %vm1958_vm8, %v2463_v46 }
  0xd7   :  { %535 = vmatpush1.bf16.msra.mxu0 %v2194_v56  ;;  %425 = vmatprep.mubr.bf16.mxu0 %v2462_v0  ;;  %v646_v51 = vpop.permute.xlu1 %645 }
  0xd8   :  { %536 = vmatprep.subr.bf16.mxu0 %v2201_v57 }
  0xdb   :  { %537 = vmatpush1.bf16.msra.mxu0 %v2199_v60 }
  0xdc   :  { %538 = vmatprep.subr.bf16.mxu0 %v2208_v61 }
  0xde   :  { %1961 = vmatmul.mubr.msk.bf16.gmra.mrb[12].mxu0 %vm1960_vm11, %v2463_v46 }
  0xdf   :  { %539 = vmatpush1.bf16.msra.mxu0 %v2206_v62  ;;  %435 = vmatprep.mubr.bf16.mxu0 %v2462_v0 }
  0xe0   :  { %540 = vmatprep.subr.bf16.mxu0 %v2214_v63 }
  0xe3   :  { %541 = vmatpush1.bf16.msra.mxu0 %v2212_v3 }
  0xe4   :  { %1203 = vmatprep.subr.bf16.mxu0 %v2694_v27 }
  0xe6   :  { %1963 = vmatmul.mubr.msk.bf16.gmra.mrb[16].mxu0 %vm1962_vm14, %v2463_v46 }
  0xe7   :  { %558 = vmatprep.mubr.bf16.mxu0 %v2462_v0 }
  0xee   :  { %1981 = vmatmul.mubr.msk.bf16.vlgmr.msra.gmra.mrb[0].mxu0 %vm1980_vm1, %v2463_v46 }
  0xef   :  { %568 = vmatprep.mubr.bf16.mxu0 %v2462_v0  ;;  %1204 = vmatpush1.bf16.msra.mxu0 %v2706_v30 }
  0xf0   :  { %1205 = vmatprep.subr.bf16.mxu0 %v2715_v32 }
  0xf3   :  { %1206 = vmatpush1.bf16.msra.mxu0 %v2723_v34 }
  0xf4   :  { %1207 = vmatprep.subr.bf16.mxu0 %v2729_v35 }
  0xf7   :  { %1208 = vmatpush1.bf16.msra.mxu0 %v2736_v36 }
  0xf8   :  { %1209 = vmatprep.subr.bf16.mxu0 %v2742_v37 }
  0xfb   :  { %1210 = vmatpush1.bf16.msra.mxu0 %v2747_v38 }
  0xfc   :  { %1371 = vmatprep.subr.bf16.mxu0 %v2694_v27 }
 0x129   :  { %v737_v6 = vpop.f32.mrb[0].mxu1 }
 0x12a   :  { %v739_v7 = vpop.f32.mrb[1].mxu1 }
 0x12b   :  { %v741_v8 = vpop.f32.mrb[2].mxu1 }
 0x12c   :  { %v742_v9 = vpop.f32.mrb[3].mxu1 }
 0x1c1   :  { %v560_v16 = vpop.f32.mrb[0].mxu0 }
 0x1c2   :  { %v621_v17 = vadd.f32 %v2853_v14, %v560_v16  ;;  %v562_v18 = vpop.f32.mrb[1].mxu0 }
 0x1c3   :  { %v622_v19 = vadd.f32 %v2857_v15, %v562_v18  ;;  %v564_v20 = vpop.f32.mrb[2].mxu0 }
 0x1c4   :  { %v744_v21 = vadd.f32 %v737_v6, %v621_v17  ;;  %v566_v22 = vpop.f32.mrb[3].mxu0  ;;  %v623_v59 = vadd.f32 %v2853_v14, %v564_v20 }
 0x1c5   :  { %v745_v23 = vadd.f32 %v739_v7, %v622_v19  ;;  %v624_v60 = vadd.f32 %v2857_v15, %v566_v22 }
 0x1c6   :  { %v1998_v24 = vmul.f32 -1.442695, %v744_v21 }
 0x1c7   :  { %v1999_v39 = vmul.f32 -1.442695, %v745_v23 }
 0x1c8   :  { %2236 = vpow2.f32 %v1998_v24 }
 0x1c9   :  { %2238 = vtanh.f32 %v745_v23 }
 0x1d2   :  { %v2237_v25 = vpop.eup %2236 }
 0x1d3   :  { %v752_v26 = vadd.f32 1.0, %v2237_v25  ;;  %v2239_v28 = vpop.eup %2238 }
 0x1d5   :  { %2240 = vrcp.f32 %v752_v26 }
 0x1d6   :  { %2242 = vpow2.f32 %v1999_v39 }
 0x1df   :  { %v2241_v29 = vpop.eup %2240 }
 0x1e0   :  { %v760_v31 = vmul.f32 %v2241_v29, %v2239_v28  ;;  %v2243_v40 = vpop.eup %2242  ;;  %v759_v43 = vmul.f32 0.0, %v2241_v29 }
 0x1e1   :  { %v753_v42 = vadd.f32 1.0, %v2243_v40 }
 0x1e2   :  { %762 = vrot.lane.b32.xlu0 %v760_v31, %s2459_s21 }
 0x1e3   :  { %2244 = vrcp.f32 %v753_v42 }
 0x1e6   :  { %648 = vperm.xlu0 %2156, %v643_v33  }
 0x1ed   :  { %v2245_v47 = vpop.eup %2244 }
 0x254   :  { %v763_v44 = vpop.permute.xlu0 %762 }
 0x255   :  { %v765_v45 = vadd.f32 %v763_v44, %v759_v43 }
 0x257   :  { %2246 = vtanh.f32 %v765_v45  ;;  %775 = vrot.lane.b32.xlu0 %v765_v45, %s2459_s21 }
 0x261   :  { %v2247_v48 = vpop.eup %2246 }
 0x262   :  { %v767_v49 = vmul.f32 %v2247_v48, %v2245_v47 }
 0x264   :  { %770 = vrot.lane.b32.xlu1 %v767_v49, %s2459_s21 }
 0x265   :  { %v649_v50 = vpop.permute.xlu0 %648 }
 0x266   :  { %v2868_v52 = vsel %vm641_vm2, %v646_v51, %v649_v50 }
 0x267   :  { %vm768_vm3 = vcmp.gt.s32.totalorder %v2868_v52, 0  ;;  %vm852_vm8 = vcmp.gt.s32.totalorder %v2868_v52, 1  ;;  %vm936_vm9 = vcmp.gt.s32.totalorder %v2868_v52, 2  ;;  %vm1020_vm13 = vcmp.gt.s32.totalorder %v2868_v52, 3 }
 0x268   :  { %vm1104_vm14 = vcmp.gt.s32.totalorder %v2868_v52, 4 }
 0x2c9   :  { %v776_v53 = vpop.permute.xlu0 %775 }
 0x2ca   :  { %v2871_v54 = vsel %vm768_vm3, %v776_v53, 0.0 }
 0x2cb   :  { %840 = vrot.lane.b32.xlu1 %v2871_v54, %s2459_s21 }
 0x2cf   :  { %128 = vperm.xlu1 %2157, %v101_v55  }
 0x2d6   :  { %v771_v56 = vpop.permute.xlu1 %770 }
 0x2d7   :  { %v773_v57 = vsel %vm768_vm3, %v771_v56, 0.0 }
 0x2d8   :  { %v779_v58 = vpack.c.bf16 %v773_v57, %v773_v57 }
 0x2da   :  { %2000 = vmatmul.mubr.msk.bf16.vlgmr.msra.gmra.mrb[4].mxu1 %vm699_vm4, %v779_v58 }
 0x2db   :  { %868 = vmatpush1.bf16.msra.mxu1 %v2706_v30  ;;  %899 = vmatprep.mubr.bf16.mxu1 %v2462_v0 }
 0x2dc   :  { %869 = vmatprep.subr.bf16.mxu1 %v2715_v32 }
 0x2df   :  { %870 = vmatpush1.bf16.msra.mxu1 %v2723_v34 }
 0x2e0   :  { %871 = vmatprep.subr.bf16.mxu1 %v2729_v35 }
 0x2e3   :  { %872 = vmatpush1.bf16.msra.mxu1 %v2736_v36 }
 0x2e4   :  { %873 = vmatprep.subr.bf16.mxu1 %v2742_v37 }
 0x2e7   :  { %874 = vmatpush1.bf16.msra.mxu1 %v2747_v38 }
 0x2e8   :  { %951 = vmatprep.subr.bf16.mxu1 %v2694_v27 }
 0x33d   :  { %v841_v18 = vpop.permute.xlu1 %840 }
 0x34e   :  { %v129_v26 = vpop.permute.xlu1 %128 }
 0x34f   :  { %vm153_vm5 = vcmp.eq.s32.totalorder %v2763_v41, %v129_v26 }
 0x3ad   :  { %v817_v61 = vpop.f32.mrb[4].mxu1 }
 0x3ae   :  { %v824_v62 = vadd.f32 %v817_v61, %v623_v59  ;;  %v819_v63 = vpop.f32.mrb[5].mxu1 }
 0x3af   :  { %v825_v1 = vadd.f32 %v819_v63, %v624_v60  ;;  %v821_v2 = vpop.f32.mrb[6].mxu1 }
 0x3b0   :  { %v2001_v3 = vmul.f32 -1.442695, %v824_v62  ;;  %v822_v4 = vpop.f32.mrb[7].mxu1 }
 0x3b1   :  { %v2002_v16 = vmul.f32 -1.442695, %v825_v1 }
 0x3b2   :  { %2248 = vpow2.f32 %v2001_v3 }
 0x3b3   :  { %2250 = vtanh.f32 %v825_v1 }
 0x3bc   :  { %v2249_v5 = vpop.eup %2248 }
 0x3bd   :  { %v832_v6 = vadd.f32 1.0, %v2249_v5  ;;  %v2251_v7 = vpop.eup %2250 }
 0x3bf   :  { %2252 = vrcp.f32 %v832_v6 }
 0x3c0   :  { %2254 = vpow2.f32 %v2002_v16  ;;  %v103_v16 = vld [vmem:[%s3204_s23 + $0x20] sm:$0xff] }
 0x3c9   :  { %v2253_v8 = vpop.eup %2252 }
 0x3ca   :  { %v844_v9 = vmul.f32 %v2253_v8, %v2251_v7  ;;  %v2255_v17 = vpop.eup %2254  ;;  %v843_v20 = vmul.f32 %v2253_v8, %v841_v18 }
 0x3cb   :  { %v833_v19 = vadd.f32 1.0, %v2255_v17 }
 0x3cc   :  { %846 = vrot.lane.b32.xlu0 %v844_v9, %s2459_s21 }
 0x3cd   :  { %2256 = vrcp.f32 %v833_v19 }
 0x3d0   :  { %131 = vperm.xlu0 %2156, %v102_v12  }
 0x3d7   :  { %v2257_v23 = vpop.eup %2256 }
 0x43e   :  { %v847_v21 = vpop.permute.xlu0 %846 }
 0x43f   :  { %v849_v22 = vadd.f32 %v847_v21, %v843_v20 }
 0x441   :  { %2258 = vtanh.f32 %v849_v22  ;;  %859 = vrot.lane.b32.xlu0 %v849_v22, %s2459_s21 }
 0x44b   :  { %v2259_v24 = vpop.eup %2258 }
 0x44c   :  { %v851_v25 = vmul.f32 %v2259_v24, %v2257_v23 }
 0x44e   :  { %854 = vrot.lane.b32.xlu1 %v851_v25, %s2459_s21 }
 0x44f   :  { %v132_v28 = vpop.permute.xlu0 %131 }
 0x450   :  { %vm154_vm6 = vcmp.eq.s32.totalorder %v2763_v41, %v132_v28 }
 0x451   :  { %vm1982_vm7 = vmpackc.low %vm154_vm6, %vm153_vm5  ;;  %vm1188_vm6 = vcmp.gt.s32.totalorder %v2868_v52, 5 }
 0x452   :  { %1983 = vmatmul.mubr.msk.bf16.gmra.mrb[4].mxu0 %vm1982_vm7, %v2463_v46  ;;  %vm1272_vm7 = vcmp.gt.s32.totalorder %v2868_v52, 6 }
 0x453   :  { %578 = vmatprep.mubr.bf16.mxu0 %v2462_v0 }
 0x4b3   :  { %v860_v29 = vpop.permute.xlu0 %859 }
 0x4b4   :  { %v862_v31 = vsel %vm852_vm8, %v860_v29, %v2871_v54 }
 0x4b5   :  { %924 = vrot.lane.b32.xlu1 %v862_v31, %s2459_s21 }
 0x4c0   :  { %v855_v33 = vpop.permute.xlu1 %854 }
 0x4c1   :  { %v857_v39 = vsel %vm852_vm8, %v855_v33, %v773_v57  ;;  %vm1356_vm8 = vcmp.gt.s32.totalorder %v2868_v52, 7 }
 0x4c2   :  { %v863_v40 = vpack.c.bf16 %v857_v39, %v857_v39 }
 0x4c4   :  { %2003 = vmatmul.mubr.msk.bf16.vlgmr.msra.gmra.mrb[8].mxu1 %vm699_vm4, %v863_v40 }
 0x4c5   :  { %952 = vmatpush1.bf16.msra.mxu1 %v2706_v30  ;;  %983 = vmatprep.mubr.bf16.mxu1 %v2462_v0 }
 0x4c6   :  { %953 = vmatprep.subr.bf16.mxu1 %v2715_v32 }
 0x4c9   :  { %954 = vmatpush1.bf16.msra.mxu1 %v2723_v34 }
 0x4ca   :  { %955 = vmatprep.subr.bf16.mxu1 %v2729_v35 }
 0x4cd   :  { %956 = vmatpush1.bf16.msra.mxu1 %v2736_v36 }
 0x4ce   :  { %957 = vmatprep.subr.bf16.mxu1 %v2742_v37 }
 0x4d1   :  { %958 = vmatpush1.bf16.msra.mxu1 %v2747_v38 }
 0x4d2   :  { %1035 = vmatprep.subr.bf16.mxu1 %v2694_v27 }
 0x525   :  { %v570_v42 = vpop.f32.mrb[4].mxu0 }
 0x526   :  { %v572_v43 = vpop.f32.mrb[5].mxu0  ;;  %v625_v47 = vadd.f32 %v2853_v14, %v570_v42 }
 0x527   :  { %v574_v44 = vpop.f32.mrb[6].mxu0  ;;  %v626_v48 = vadd.f32 %v2857_v15, %v572_v43  ;;  %v925_v1 = vpop.permute.xlu1 %924  ;;  %v104_v43 = vld [vmem:[%s3204_s23 + $0x28] sm:$0xff] }
 0x528   :  { %v576_v45 = vpop.f32.mrb[7].mxu0  ;;  %v627_v20 = vadd.f32 %v2853_v14, %v574_v44 }
 0x529   :  { %v628_v21 = vadd.f32 %v2857_v15, %v576_v45 }
 0x597   :  { %v901_v49 = vpop.f32.mrb[8].mxu1 }
 0x598   :  { %v908_v50 = vadd.f32 %v901_v49, %v625_v47  ;;  %v903_v51 = vpop.f32.mrb[9].mxu1 }
 0x599   :  { %v909_v53 = vadd.f32 %v903_v51, %v626_v48  ;;  %v905_v54 = vpop.f32.mrb[10].mxu1 }
 0x59a   :  { %v2004_v55 = vmul.f32 -1.442695, %v908_v50  ;;  %v906_v56 = vpop.f32.mrb[11].mxu1 }
 0x59b   :  { %v2005_v62 = vmul.f32 -1.442695, %v909_v53 }
 0x59c   :  { %2260 = vpow2.f32 %v2004_v55 }
 0x59d   :  { %2262 = vtanh.f32 %v909_v53 }
 0x5a6   :  { %v2261_v57 = vpop.eup %2260 }
 0x5a7   :  { %v916_v58 = vadd.f32 1.0, %v2261_v57  ;;  %v2263_v59 = vpop.eup %2262 }
 0x5a9   :  { %2264 = vrcp.f32 %v916_v58 }
 0x5aa   :  { %2266 = vpow2.f32 %v2005_v62 }
 0x5b3   :  { %v2265_v60 = vpop.eup %2264 }
 0x5b4   :  { %v928_v61 = vmul.f32 %v2265_v60, %v2263_v59  ;;  %v2267_v63 = vpop.eup %2266  ;;  %v927_v3 = vmul.f32 %v2265_v60, %v925_v1 }
 0x5b5   :  { %v917_v2 = vadd.f32 1.0, %v2267_v63 }
 0x5b6   :  { %930 = vrot.lane.b32.xlu0 %v928_v61, %s2459_s21 }
 0x5b7   :  { %2268 = vrcp.f32 %v917_v2 }
 0x5c1   :  { %v2269_v6 = vpop.eup %2268 }
 0x628   :  { %v931_v4 = vpop.permute.xlu0 %930 }
 0x629   :  { %v933_v5 = vadd.f32 %v931_v4, %v927_v3 }
 0x62b   :  { %2270 = vtanh.f32 %v933_v5  ;;  %943 = vrot.lane.b32.xlu0 %v933_v5, %s2459_s21 }
 0x635   :  { %v2271_v7 = vpop.eup %2270 }
 0x636   :  { %v935_v8 = vmul.f32 %v2271_v7, %v2269_v6 }
 0x638   :  { %938 = vrot.lane.b32.xlu1 %v935_v8, %s2459_s21 }
 0x69d   :  { %v944_v9 = vpop.permute.xlu0 %943 }
 0x69e   :  { %v946_v12 = vsel %vm936_vm9, %v944_v9, %v862_v31 }
 0x69f   :  { %1008 = vrot.lane.b32.xlu1 %v946_v12, %s2459_s21 }
 0x6a3   :  { %134 = vperm.xlu1 %2157, %v103_v16  }
 0x6aa   :  { %v939_v17 = vpop.permute.xlu1 %938 }
 0x6ab   :  { %v941_v18 = vsel %vm936_vm9, %v939_v17, %v857_v39  ;;  %vm2465_vm9 = vmmov 0  }
 0x6ac   :  { %v947_v19 = vpack.c.bf16 %v941_v18, %v941_v18 }
 0x6ae   :  { %2006 = vmatmul.mubr.msk.bf16.vlgmr.msra.gmra.mrb[12].mxu1 %vm699_vm4, %v947_v19 }
 0x6af   :  { %1036 = vmatpush1.bf16.msra.mxu1 %v2706_v30  ;;  %1067 = vmatprep.mubr.bf16.mxu1 %v2462_v0 }
 0x6b0   :  { %1037 = vmatprep.subr.bf16.mxu1 %v2715_v32 }
 0x6b3   :  { %1038 = vmatpush1.bf16.msra.mxu1 %v2723_v34 }
 0x6b4   :  { %1039 = vmatprep.subr.bf16.mxu1 %v2729_v35 }
 0x6b7   :  { %1040 = vmatpush1.bf16.msra.mxu1 %v2736_v36 }
 0x6b8   :  { %1041 = vmatprep.subr.bf16.mxu1 %v2742_v37 }
 0x6bb   :  { %1042 = vmatpush1.bf16.msra.mxu1 %v2747_v38 }
 0x6bc   :  { %1119 = vmatprep.subr.bf16.mxu1 %v2694_v27 }
 0x711   :  { %v1009_v47 = vpop.permute.xlu1 %1008 }
 0x722   :  { %v135_v56 = vpop.permute.xlu1 %134 }
 0x723   :  { %vm155_vm10 = vcmp.eq.s32.totalorder %v2763_v41, %v135_v56 }
 0x781   :  { %v985_v22 = vpop.f32.mrb[12].mxu1 }
 0x782   :  { %v992_v23 = vadd.f32 %v985_v22, %v627_v20  ;;  %v987_v24 = vpop.f32.mrb[13].mxu1 }
 0x783   :  { %v993_v25 = vadd.f32 %v987_v24, %v628_v21  ;;  %v989_v26 = vpop.f32.mrb[14].mxu1 }
 0x784   :  { %v2007_v28 = vmul.f32 -1.442695, %v992_v23  ;;  %v990_v29 = vpop.f32.mrb[15].mxu1 }
 0x785   :  { %v2008_v44 = vmul.f32 -1.442695, %v993_v25 }
 0x786   :  { %2272 = vpow2.f32 %v2007_v28 }
 0x787   :  { %2274 = vtanh.f32 %v993_v25 }
 0x790   :  { %v2273_v31 = vpop.eup %2272 }
 0x791   :  { %v1000_v33 = vadd.f32 1.0, %v2273_v31  ;;  %v2275_v39 = vpop.eup %2274 }
 0x793   :  { %2276 = vrcp.f32 %v1000_v33 }
 0x794   :  { %2278 = vpow2.f32 %v2008_v44  ;;  %v105_v44 = vld [vmem:[%s3204_s23 + $0x30] sm:$0xff] }
 0x79d   :  { %v2277_v40 = vpop.eup %2276 }
 0x79e   :  { %v1012_v42 = vmul.f32 %v2277_v40, %v2275_v39  ;;  %v2279_v45 = vpop.eup %2278  ;;  %v1011_v49 = vmul.f32 %v2277_v40, %v1009_v47 }
 0x79f   :  { %v1001_v48 = vadd.f32 1.0, %v2279_v45  ;;  %v107_v45 = vld [vmem:[%s3204_s23 + $0x40] sm:$0xff] }
 0x7a0   :  { %1014 = vrot.lane.b32.xlu0 %v1012_v42, %s2459_s21 }
 0x7a1   :  { %2280 = vrcp.f32 %v1001_v48 }
 0x7a4   :  { %137 = vperm.xlu0 %2156, %v104_v43  }
 0x7ab   :  { %v2281_v53 = vpop.eup %2280 }
 0x812   :  { %v1015_v50 = vpop.permute.xlu0 %1014 }
 0x813   :  { %v1017_v51 = vadd.f32 %v1015_v50, %v1011_v49 }
 0x815   :  { %2282 = vtanh.f32 %v1017_v51  ;;  %1027 = vrot.lane.b32.xlu0 %v1017_v51, %s2459_s21 }
 0x81f   :  { %v2283_v54 = vpop.eup %2282 }
 0x820   :  { %v1019_v55 = vmul.f32 %v2283_v54, %v2281_v53 }
 0x822   :  { %1022 = vrot.lane.b32.xlu1 %v1019_v55, %s2459_s21 }
 0x823   :  { %v138_v57 = vpop.permute.xlu0 %137 }
 0x824   :  { %vm156_vm11 = vcmp.eq.s32.totalorder %v2763_v41, %v138_v57 }
 0x825   :  { %vm1984_vm12 = vmpackc.low %vm156_vm11, %vm155_vm10  ;;  %vm1590_vm10 = vcmask 1044480   ;;  %vm1586_vm11 = vcmask 736256  }
 0x826   :  { %1985 = vmatmul.mubr.msk.bf16.gmra.mrb[8].mxu0 %vm1984_vm12, %v2463_v46  ;;  %vm1440_vm12 = vcmp.gt.s32.totalorder %v2868_v52, 8 }
 0x827   :  { %588 = vmatprep.mubr.bf16.mxu0 %v2462_v0 }
 0x887   :  { %v1028_v58 = vpop.permute.xlu0 %1027 }
 0x888   :  { %v1030_v59 = vsel %vm1020_vm13, %v1028_v58, %v946_v12 }
 0x889   :  { %1092 = vrot.lane.b32.xlu1 %v1030_v59, %s2459_s21 }
 0x894   :  { %v1023_v60 = vpop.permute.xlu1 %1022 }
 0x895   :  { %v1025_v61 = vsel %vm1020_vm13, %v1023_v60, %v941_v18 }
 0x896   :  { %v1031_v62 = vpack.c.bf16 %v1025_v61, %v1025_v61 }
 0x898   :  { %2009 = vmatmul.mubr.msk.bf16.vlgmr.msra.gmra.mrb[16].mxu1 %vm699_vm4, %v1031_v62 }
 0x899   :  { %1120 = vmatpush1.bf16.msra.mxu1 %v2706_v30  ;;  %1151 = vmatprep.mubr.bf16.mxu1 %v2462_v0 }
 0x89a   :  { %1121 = vmatprep.subr.bf16.mxu1 %v2715_v32 }
 0x89d   :  { %1122 = vmatpush1.bf16.msra.mxu1 %v2723_v34 }
 0x89e   :  { %1123 = vmatprep.subr.bf16.mxu1 %v2729_v35 }
 0x8a1   :  { %1124 = vmatpush1.bf16.msra.mxu1 %v2736_v36 }
 0x8a2   :  { %1125 = vmatprep.subr.bf16.mxu1 %v2742_v37 }
 0x8a5   :  { %1126 = vmatpush1.bf16.msra.mxu1 %v2747_v38 }
 0x8a6   :  { %1287 = vmatprep.subr.bf16.mxu1 %v2694_v27 }
 0x8f9   :  { %v580_v63 = vpop.f32.mrb[8].mxu0 }
 0x8fa   :  { %v582_v1 = vpop.f32.mrb[9].mxu0  ;;  %v629_v4 = vadd.f32 %v2853_v14, %v580_v63 }
 0x8fb   :  { %v584_v2 = vpop.f32.mrb[10].mxu0  ;;  %v630_v5 = vadd.f32 %v2857_v15, %v582_v1  ;;  %v1093_v25 = vpop.permute.xlu1 %1092 }
 0x8fc   :  { %v586_v3 = vpop.f32.mrb[11].mxu0  ;;  %v631_v50 = vadd.f32 %v2853_v14, %v584_v2  ;;  %v108_v2 = vld [vmem:[%s3204_s23 + $0x48] sm:$0xff] }
 0x8fd   :  { %v632_v51 = vadd.f32 %v2857_v15, %v586_v3 }
 0x96b   :  { %v1069_v6 = vpop.f32.mrb[16].mxu1 }
 0x96c   :  { %v1076_v7 = vadd.f32 %v1069_v6, %v629_v4  ;;  %v1071_v8 = vpop.f32.mrb[17].mxu1 }
 0x96d   :  { %v1077_v9 = vadd.f32 %v1071_v8, %v630_v5  ;;  %v1073_v12 = vpop.f32.mrb[18].mxu1 }
 0x96e   :  { %v2010_v16 = vmul.f32 -1.442695, %v1076_v7  ;;  %v1074_v17 = vpop.f32.mrb[19].mxu1 }
 0x96f   :  { %v2011_v23 = vmul.f32 -1.442695, %v1077_v9 }
 0x970   :  { %2284 = vpow2.f32 %v2010_v16 }
 0x971   :  { %2286 = vtanh.f32 %v1077_v9 }
 0x97a   :  { %v2285_v18 = vpop.eup %2284 }
 0x97b   :  { %v1084_v19 = vadd.f32 1.0, %v2285_v18  ;;  %v2287_v20 = vpop.eup %2286 }
 0x97d   :  { %2288 = vrcp.f32 %v1084_v19 }
 0x97e   :  { %2290 = vpow2.f32 %v2011_v23 }
 0x987   :  { %v2289_v21 = vpop.eup %2288 }
 0x988   :  { %v1096_v22 = vmul.f32 %v2289_v21, %v2287_v20  ;;  %v2291_v24 = vpop.eup %2290  ;;  %v1095_v28 = vmul.f32 %v2289_v21, %v1093_v25 }
 0x989   :  { %v1085_v26 = vadd.f32 1.0, %v2291_v24 }
 0x98a   :  { %1098 = vrot.lane.b32.xlu0 %v1096_v22, %s2459_s21 }
 0x98b   :  { %2292 = vrcp.f32 %v1085_v26 }
 0x995   :  { %v2293_v33 = vpop.eup %2292 }
 0x9fc   :  { %v1099_v29 = vpop.permute.xlu0 %1098 }
 0x9fd   :  { %v1101_v31 = vadd.f32 %v1099_v29, %v1095_v28 }
 0x9ff   :  { %2294 = vtanh.f32 %v1101_v31  ;;  %1111 = vrot.lane.b32.xlu0 %v1101_v31, %s2459_s21 }
 0xa09   :  { %v2295_v39 = vpop.eup %2294 }
 0xa0a   :  { %v1103_v40 = vmul.f32 %v2295_v39, %v2293_v33 }
 0xa0c   :  { %1106 = vrot.lane.b32.xlu1 %v1103_v40, %s2459_s21 }
 0xa71   :  { %v1112_v42 = vpop.permute.xlu0 %1111 }
 0xa72   :  { %v2963_v43 = vsel %vm1104_vm14, %v1112_v42, %v1030_v59 }
 0xa73   :  { %1176 = vrot.lane.b32.xlu1 %v2963_v43, %s2459_s21 }
 0xa77   :  { %140 = vperm.xlu1 %2157, %v105_v44  }
 0xa7b   :  { %146 = vperm.xlu1 %2157, %v107_v45  }
 0xa7e   :  { %v1107_v47 = vpop.permute.xlu1 %1106 }
 0xa7f   :  { %v2973_v48 = vsel %vm1104_vm14, %v1107_v47, %v1025_v61 }
 0xa80   :  { %v1115_v49 = vpack.c.bf16 %v2973_v48, %v2973_v48 }
 0xa82   :  { %2012 = vmatmul.mubr.msk.bf16.vlgmr.msra.gmra.mrb[20].mxu1 %vm699_vm4, %v1115_v49 }
 0xa83   :  { %1288 = vmatpush1.bf16.msra.mxu1 %v2706_v30  ;;  %1319 = vmatprep.mubr.bf16.mxu1 %v2462_v0 }
 0xa84   :  { %1289 = vmatprep.subr.bf16.mxu1 %v2715_v32 }
 0xa87   :  { %1290 = vmatpush1.bf16.msra.mxu1 %v2723_v34 }
 0xa88   :  { %1291 = vmatprep.subr.bf16.mxu1 %v2729_v35 }
 0xa8b   :  { %1292 = vmatpush1.bf16.msra.mxu1 %v2736_v36 }
 0xa8c   :  { %1293 = vmatprep.subr.bf16.mxu1 %v2742_v37 }
 0xa8f   :  { %1294 = vmatpush1.bf16.msra.mxu1 %v2747_v38 }
 0xa90   :  { %1455 = vmatprep.subr.bf16.mxu1 %v2694_v27  ;;  %v106_v27 = vld [vmem:[%s3204_s23 + $0x38] sm:$0xff] }
 0xae5   :  { %v1177_v5 = vpop.permute.xlu1 %1176 }
 0xaf6   :  { %v141_v18 = vpop.permute.xlu1 %140 }
 0xaf7   :  { %vm157_vm15 = vcmp.eq.s32.totalorder %v2763_v41, %v141_v18 }
 0xafa   :  { %v147_v21 = vpop.permute.xlu1 %146 }
 0xafb   :  { %vm159_vm3 = vcmp.eq.s32.totalorder %v2763_v41, %v147_v21 }
 0xb55   :  { %v1153_v53 = vpop.f32.mrb[20].mxu1 }
 0xb56   :  { %v1160_v54 = vadd.f32 %v1153_v53, %v631_v50  ;;  %v1155_v55 = vpop.f32.mrb[21].mxu1 }
 0xb57   :  { %v1161_v56 = vadd.f32 %v1155_v55, %v632_v51  ;;  %v1157_v57 = vpop.f32.mrb[22].mxu1 }
 0xb58   :  { %v2013_v58 = vmul.f32 -1.442695, %v1160_v54  ;;  %v1158_v59 = vpop.f32.mrb[23].mxu1 }
 0xb59   :  { %v2014_v3 = vmul.f32 -1.442695, %v1161_v56 }
 0xb5a   :  { %2296 = vpow2.f32 %v2013_v58 }
 0xb5b   :  { %2298 = vtanh.f32 %v1161_v56 }
 0xb64   :  { %v2297_v60 = vpop.eup %2296 }
 0xb65   :  { %v1168_v61 = vadd.f32 1.0, %v2297_v60  ;;  %v2299_v62 = vpop.eup %2298 }
 0xb67   :  { %2300 = vrcp.f32 %v1168_v61 }
 0xb68   :  { %2302 = vpow2.f32 %v2014_v3  ;;  %v2357_v3 = vld [vmem:[%s3187_s6 + $0x14] ss:$8 sps:$4 sm:$0xff]  }
 0xb71   :  { %v2301_v63 = vpop.eup %2300 }
 0xb72   :  { %v1180_v1 = vmul.f32 %v2301_v63, %v2299_v62  ;;  %v2303_v4 = vpop.eup %2302  ;;  %v1179_v7 = vmul.f32 %v2301_v63, %v1177_v5  ;;  %v2359_v5 = vld [vmem:[%s3187_s6 + $0x24] ss:$8 sps:$4 sm:$0xff]  }
 0xb73   :  { %v1169_v6 = vadd.f32 1.0, %v2303_v4  ;;  %v2358_v4 = vld [vmem:[%s3187_s6 + $0x10] ss:$8 sps:$4 sm:$0xff]  }
 0xb74   :  { %1182 = vrot.lane.b32.xlu0 %v1180_v1, %s2459_s21 }
 0xb75   :  { %2304 = vrcp.f32 %v1169_v6  ;;  %v2360_v6 = vld [vmem:[%s3187_s6 + $0x20] ss:$8 sps:$4 sm:$0xff]  }
 0xb78   :  { %143 = vperm.xlu0 %2156, %v106_v27  }
 0xb7c   :  { %149 = vperm.xlu0 %2156, %v108_v2   ;;  %v2356_v2 = vld [vmem:[%s3187_s6] ss:$8 sps:$4 sm:$0xff]  }
 0xb7f   :  { %v2305_v12 = vpop.eup %2304 }
 0xbe6   :  { %v1183_v8 = vpop.permute.xlu0 %1182 }
 0xbe7   :  { %v1185_v9 = vadd.f32 %v1183_v8, %v1179_v7  ;;  %v2361_v7 = vld [vmem:[%s3187_s6 + $0x34] ss:$8 sps:$4 sm:$0xff]   ;;  %v2362_v8 = vld [vmem:[%s3187_s6 + $0x30] ss:$8 sps:$4 sm:$0xff]  }
 0xbe9   :  { %2306 = vtanh.f32 %v1185_v9  ;;  %1195 = vrot.lane.b32.xlu0 %v1185_v9, %s2459_s21 }
 0xbf3   :  { %v2307_v16 = vpop.eup %2306 }
 0xbf4   :  { %v1187_v17 = vmul.f32 %v2307_v16, %v2305_v12 }
 0xbf6   :  { %1190 = vrot.lane.b32.xlu1 %v1187_v17, %s2459_s21 }
 0xbf7   :  { %v144_v19 = vpop.permute.xlu0 %143 }
 0xbf8   :  { %vm158_vm0 = vcmp.eq.s32.totalorder %v2763_v41, %v144_v19 }
 0xbf9   :  { %vm1986_vm1 = vmpackc.low %vm158_vm0, %vm157_vm15 }
 0xbfa   :  { %1987 = vmatmul.mubr.msk.bf16.gmra.mrb[12].mxu0 %vm1986_vm1, %v2463_v46  ;;  %vm1524_vm1 = vcmp.gt.s32.totalorder %v2868_v52, 9 }
 0xbfb   :  { %v150_v20 = vpop.permute.xlu0 %149  ;;  %598 = vmatprep.mubr.bf16.mxu0 %v2462_v0 }
 0xbfc   :  { %vm160_vm2 = vcmp.eq.s32.totalorder %v2763_v41, %v150_v20 }
 0xbfd   :  { %vm1988_vm5 = vmpackc.low %vm160_vm2, %vm159_vm3 }
 0xc02   :  { %1989 = vmatmul.mubr.msk.bf16.gmra.mrb[16].mxu0 %vm1988_vm5, %v2463_v46 }
 0xc03   :  { %1235 = vmatprep.mubr.bf16.mxu0 %v2462_v0 }
 0xc5b   :  { %v1196_v22 = vpop.permute.xlu0 %1195 }
 0xc5c   :  { %v1198_v23 = vsel %vm1188_vm6, %v1196_v22, %v2963_v43 }
 0xc5d   :  { %1260 = vrot.lane.b32.xlu1 %v1198_v23, %s2459_s21 }
 0xc68   :  { %v1191_v24 = vpop.permute.xlu1 %1190 }
 0xc69   :  { %v1193_v25 = vsel %vm1188_vm6, %v1191_v24, %v2973_v48 }
 0xc6a   :  { %v1199_v26 = vpack.c.bf16 %v1193_v25, %v1193_v25 }
 0xc6c   :  { %2015 = vmatmul.mubr.msk.bf16.vlgmr.msra.gmra.mrb[20].mxu0 %vm699_vm4, %v1199_v26 }
 0xc6d   :  { %1372 = vmatpush1.bf16.msra.mxu0 %v2706_v30  ;;  %1403 = vmatprep.mubr.bf16.mxu0 %v2462_v0 }
 0xc6e   :  { %1373 = vmatprep.subr.bf16.mxu0 %v2715_v32 }
 0xc71   :  { %1374 = vmatpush1.bf16.msra.mxu0 %v2723_v34 }
 0xc72   :  { %1375 = vmatprep.subr.bf16.mxu0 %v2729_v35 }
 0xc75   :  { %1376 = vmatpush1.bf16.msra.mxu0 %v2736_v36 }
 0xc76   :  { %1377 = vmatprep.subr.bf16.mxu0 %v2742_v37 }
 0xc79   :  { %1378 = vmatpush1.bf16.msra.mxu0 %v2747_v38 }
 0xccd   :  { %v590_v41 = vpop.f32.mrb[12].mxu0 }
 0xcce   :  { %v592_v46 = vpop.f32.mrb[13].mxu0  ;;  %v633_v34 = vadd.f32 %v2853_v14, %v590_v41 }
 0xccf   :  { %v594_v28 = vpop.f32.mrb[14].mxu0  ;;  %v634_v35 = vadd.f32 %v2857_v15, %v592_v46  ;;  %v1261_v53 = vpop.permute.xlu1 %1260 }
 0xcd0   :  { %v596_v29 = vpop.f32.mrb[15].mxu0  ;;  %v635_v9 = vadd.f32 %v2853_v14, %v594_v28 }
 0xcd1   :  { %v636_v12 = vadd.f32 %v2857_v15, %v596_v29 }
 0xcd5   :  { %v3019_v31 = vpop.f32.mrb[16].mxu0 }
 0xcd6   :  { %v3021_v30 = vpop.f32.mrb[17].mxu0 }
 0xcd7   :  { %v3023_v33 = vpop.f32.mrb[18].mxu0 }
 0xcd8   :  { %v3025_v32 = vpop.f32.mrb[19].mxu0 }
 0xd3f   :  { %v1237_v36 = vpop.f32.mrb[20].mxu0 }
 0xd40   :  { %v1244_v37 = vadd.f32 %v1237_v36, %v633_v34  ;;  %v1239_v39 = vpop.f32.mrb[21].mxu0 }
 0xd41   :  { %v1245_v38 = vadd.f32 %v1239_v39, %v634_v35  ;;  %v1241_v40 = vpop.f32.mrb[22].mxu0 }
 0xd42   :  { %v2016_v42 = vmul.f32 -1.442695, %v1244_v37  ;;  %v1242_v43 = vpop.f32.mrb[23].mxu0 }
 0xd43   :  { %v2017_v50 = vmul.f32 -1.442695, %v1245_v38 }
 0xd44   :  { %2308 = vpow2.f32 %v2016_v42 }
 0xd45   :  { %2310 = vtanh.f32 %v1245_v38 }
 0xd4e   :  { %v2309_v44 = vpop.eup %2308 }
 0xd4f   :  { %v1252_v45 = vadd.f32 1.0, %v2309_v44  ;;  %v2311_v47 = vpop.eup %2310 }
 0xd51   :  { %2312 = vrcp.f32 %v1252_v45 }
 0xd52   :  { %2314 = vpow2.f32 %v2017_v50  ;;  %v2219_v50 = vld [vmem:[%s3191_s10 + $0x8] sm:$0xff]  }
 0xd5b   :  { %v2313_v48 = vpop.eup %2312 }
 0xd5c   :  { %v1264_v49 = vmul.f32 %v2313_v48, %v2311_v47  ;;  %v2315_v51 = vpop.eup %2314  ;;  %v1263_v55 = vmul.f32 %v2313_v48, %v1261_v53  ;;  %v2218_v48 = vld [vmem:[%s3191_s10] sm:$0xff]   ;;  %v2221_v53 = vld [vmem:[%s3191_s10 + $0x18] sm:$0xff]  }
 0xd5d   :  { %v1253_v54 = vadd.f32 1.0, %v2315_v51  ;;  %v2220_v51 = vld [vmem:[%s3191_s10 + $0x10] sm:$0xff]  }
 0xd5e   :  { %1266 = vrot.lane.b32.xlu0 %v1264_v49, %s2459_s21  ;;  %v2464_v49 = vmov 0.0  }
 0xd5f   :  { %2316 = vrcp.f32 %v1253_v54  ;;  %2074 = vmatprep.subr.bf16.mxu0 %v2464_v49  ;;  %v2222_v54 = vld [vmem:[%s3191_s10 + $0x20] sm:$0xff]  }
 0xd69   :  { %v2317_v58 = vpop.eup %2316 }
 0xdd0   :  { %v1267_v56 = vpop.permute.xlu0 %1266 }
 0xdd1   :  { %v1269_v57 = vadd.f32 %v1267_v56, %v1263_v55  ;;  %v2223_v55 = vld [vmem:[%s3191_s10 + $0x28] sm:$0x1f]   ;;  %v1530_v56 = vld [vmem:[%s3190_s9] sm:$0x3] }
 0xdd3   :  { %2318 = vtanh.f32 %v1269_v57  ;;  %1279 = vrot.lane.b32.xlu0 %v1269_v57, %s2459_s21  ;;  %v1592_v57 = vsel %vm1590_vm10, %v2223_v55, 0 }
 0xddd   :  { %v2319_v59 = vpop.eup %2318 }
 0xdde   :  { %v1271_v60 = vmul.f32 %v2319_v59, %v2317_v58  ;;  %v1531_v58 = vpack.c.bf16 %v1530_v56, %v1530_v56  ;;  %v637_v59 = vadd.f32 %v2853_v14, %v3019_v31 }
 0xde0   :  { %1274 = vrot.lane.b32.xlu1 %v1271_v60, %s2459_s21  ;;  %v638_v60 = vadd.f32 %v2857_v15, %v3021_v30 }
 0xe45   :  { %v1280_v61 = vpop.permute.xlu0 %1279 }
 0xe46   :  { %v1282_v62 = vsel %vm1272_vm7, %v1280_v61, %v1198_v23 }
 0xe47   :  { %1344 = vrot.lane.b32.xlu1 %v1282_v62, %s2459_s21 }
 0xe52   :  { %v1275_v63 = vpop.permute.xlu1 %1274 }
 0xe53   :  { %v1277_v1 = vsel %vm1272_vm7, %v1275_v63, %v1193_v25 }
 0xe54   :  { %v1283_v27 = vpack.c.bf16 %v1277_v1, %v1277_v1 }
 0xe56   :  { %2018 = vmatmul.mubr.msk.bf16.vlgmr.msra.gmra.mrb[24].mxu1 %vm699_vm4, %v1283_v27 }
 0xe57   :  { %1456 = vmatpush1.bf16.msra.mxu1 %v2356_v2  ;;  %1487 = vmatprep.mubr.bf16.mxu1 %v2462_v0 }
 0xe58   :  { %1457 = vmatprep.subr.bf16.mxu1 %v2357_v3 }
 0xe5b   :  { %1458 = vmatpush1.bf16.msra.mxu1 %v2358_v4 }
 0xe5c   :  { %1459 = vmatprep.subr.bf16.mxu1 %v2359_v5 }
 0xe5f   :  { %1460 = vmatpush1.bf16.msra.mxu1 %v2360_v6 }
 0xe60   :  { %1461 = vmatprep.subr.bf16.mxu1 %v2361_v7 }
 0xe63   :  { %1462 = vmatpush1.bf16.msra.mxu1 %v2362_v8 }
 0xe64   :  { %2090 = vmatprep.subr.bf16.mxu1 %v2464_v49 }
 0xeb9   :  { %v1345_v29 = vpop.permute.xlu1 %1344 }
 0xf29   :  { %v1321_v16 = vpop.f32.mrb[24].mxu1 }
 0xf2a   :  { %v1328_v17 = vadd.f32 %v1321_v16, %v635_v9  ;;  %v1323_v18 = vpop.f32.mrb[25].mxu1 }
 0xf2b   :  { %v1329_v19 = vadd.f32 %v1323_v18, %v636_v12  ;;  %v1325_v20 = vpop.f32.mrb[26].mxu1 }
 0xf2c   :  { %v2019_v21 = vmul.f32 -1.442695, %v1328_v17  ;;  %v1326_v22 = vpop.f32.mrb[27].mxu1 }
 0xf2d   :  { %v2020_v46 = vmul.f32 -1.442695, %v1329_v19 }
 0xf2e   :  { %2320 = vpow2.f32 %v2019_v21 }
 0xf2f   :  { %2322 = vtanh.f32 %v1329_v19 }
 0xf38   :  { %v2321_v23 = vpop.eup %2320 }
 0xf39   :  { %v1336_v24 = vadd.f32 1.0, %v2321_v23  ;;  %v2323_v25 = vpop.eup %2322 }
 0xf3b   :  { %2324 = vrcp.f32 %v1336_v24 }
 0xf3c   :  { %2326 = vpow2.f32 %v2020_v46 }
 0xf45   :  { %v2325_v26 = vpop.eup %2324 }
 0xf46   :  { %v1348_v41 = vmul.f32 %v2325_v26, %v2323_v25  ;;  %v2327_v28 = vpop.eup %2326  ;;  %v1347_v35 = vmul.f32 %v2325_v26, %v1345_v29  ;;  %v3115_v26 = vld [vmem:[%s3189_s8] sm:$0xff] }
 0xf47   :  { %v1337_v34 = vadd.f32 1.0, %v2327_v28  ;;  %vm1719_vm13 = vcmp.eq.s32.totalorder %v3115_v26, 0  ;;  %vm1730_vm14 = vcmp.eq.s32.totalorder %v3115_v26, 1 }
 0xf48   :  { %1350 = vrot.lane.b32.xlu0 %v1348_v41, %s2459_s21  ;;  %v1720_v28 = vsel %vm1719_vm13, 1, %v2462_v0 }
 0xf49   :  { %2328 = vrcp.f32 %v1337_v34 }
 0xf53   :  { %v2329_v39 = vpop.eup %2328 }
 0xfba   :  { %v1351_v36 = vpop.permute.xlu0 %1350 }
 0xfbb   :  { %v1353_v37 = vadd.f32 %v1351_v36, %v1347_v35  ;;  %v2224_v35 = vld [vmem:[#allocation2] sm:$0xff]  }
 0xfbd   :  { %2330 = vtanh.f32 %v1353_v37  ;;  %1363 = vrot.lane.b32.xlu0 %v1353_v37, %s2459_s21  ;;  %v2225_v37 = vld [vmem:[#allocation2 + $0x8] sm:$0xff]  }
 0xfc7   :  { %v2331_v38 = vpop.eup %2330 }
 0xfc8   :  { %v1355_v40 = vmul.f32 %v2331_v38, %v2329_v39  ;;  %v2027_v39 = vld [vmem:[%s3192_s11] ss:$0 sm:$0xff] }
 0xfca   :  { %1358 = vrot.lane.b32.xlu1 %v1355_v40, %s2459_s21  ;;  %v2226_v40 = vld [vmem:[#allocation2 + $0x10] sm:$0xff]  }
0x102f   :  { %v1364_v42 = vpop.permute.xlu0 %1363 }
0x1030   :  { %v3063_v43 = vsel %vm1356_vm8, %v1364_v42, %v1282_v62 }
0x1031   :  { %1428 = vrot.lane.b32.xlu1 %v3063_v43, %s2459_s21 }
0x103c   :  { %v1359_v44 = vpop.permute.xlu1 %1358 }
0x103d   :  { %v3067_v45 = vsel %vm1356_vm8, %v1359_v44, %v1277_v1 }
0x103e   :  { %v1367_v47 = vpack.c.bf16 %v3067_v45, %v3067_v45 }
0x1040   :  { %2021 = vmatmul.mubr.msk.bf16.vlgmr.msra.gmra.mrb[24].mxu0 %vm699_vm4, %v1367_v47  ;;  %v640_v47 = vadd.f32 %v2857_v15, %v3025_v32  ;;  %v2230_v15 = vld [vmem:[#allocation7 + $0x10] sm:$0xff]  }
0x1041   :  { %2086 = vmatprep.mubr.msk.bf16.mxu0 %vm2465_vm9, %v2464_v49  ;;  %2075 = vmatpush3.bf16.msra.mxu0 %v2218_v48 }
0x1042   :  { %2076 = vmatprep.subr.bf16.mxu0 %v2464_v49 }
0x1045   :  { %2077 = vmatpush3.bf16.msra.mxu0 %v2219_v50 }
0x1046   :  { %2078 = vmatprep.subr.bf16.mxu0 %v2464_v49 }
0x1049   :  { %2079 = vmatpush3.bf16.msra.mxu0 %v2220_v51 }
0x104a   :  { %2080 = vmatprep.subr.bf16.mxu0 %v2464_v49 }
0x104d   :  { %2081 = vmatpush3.bf16.msra.mxu0 %v2221_v53 }
0x104e   :  { %2082 = vmatprep.subr.bf16.mxu0 %v2464_v49 }
0x1051   :  { %2083 = vmatpush3.bf16.msra.mxu0 %v2222_v54 }
0x1052   :  { %2084 = vmatprep.subr.bf16.mxu0 %v2464_v49 }
0x1055   :  { %2085 = vmatpush3.bf16.msra.mxu0 %v1592_v57 }
0x1056   :  { %2114 = vmatprep.subr.bf16.mxu0 %v2464_v49 }
0x1058   :  { %2087 = vmatmul.mubr.msk.bf16.vlgmr.msra.gmra.mrb[28].mxu0 %vm1586_vm11, %v1531_v58 }
0x1059   :  { %2122 = vmatprep.mubr.msk.bf16.mxu0 %vm2465_vm9, %v2464_v49 }
0x10a3   :  { %v1429_v9 = vpop.permute.xlu1 %1428 }
0x1113   :  { %v1405_v61 = vpop.f32.mrb[24].mxu0 }
0x1114   :  { %v1412_v62 = vadd.f32 %v1405_v61, %v637_v59  ;;  %v1407_v63 = vpop.f32.mrb[25].mxu0 }
0x1115   :  { %v1413_v1 = vadd.f32 %v1407_v63, %v638_v60  ;;  %v1409_v27 = vpop.f32.mrb[26].mxu0 }
0x1116   :  { %v2022_v2 = vmul.f32 -1.442695, %v1412_v62  ;;  %v1410_v3 = vpop.f32.mrb[27].mxu0  ;;  %v1731_v27 = vsel %vm1730_vm14, 1, %v2462_v0 }
0x1117   :  { %v2023_v31 = vmul.f32 -1.442695, %v1413_v1  ;;  %v2232_v3 = vld [vmem:[#allocation5] sm:$0xff]  }
0x1118   :  { %2332 = vpow2.f32 %v2022_v2  ;;  %v2231_v2 = vld [vmem:[#allocation7 + $0x18] sm:$0xff]   ;;  %2115 = vmatpush3.bf16.msra.mxu0 %v2232_v3 }
0x1119   :  { %2334 = vtanh.f32 %v1413_v1  ;;  %2116 = vmatprep.subr.bf16.mxu0 %v2464_v49 }
0x1122   :  { %v2333_v4 = vpop.eup %2332 }
0x1123   :  { %v1420_v5 = vadd.f32 1.0, %v2333_v4  ;;  %v2335_v6 = vpop.eup %2334  ;;  %v2233_v4 = vld [vmem:[#allocation5 + $0x8] sm:$0xff]  }
0x1124   :  { %2117 = vmatpush3.bf16.msra.mxu0 %v2233_v4 }
0x1125   :  { %2336 = vrcp.f32 %v1420_v5  ;;  %v2234_v5 = vld [vmem:[#allocation5 + $0x10] sm:$0xff]   ;;  %2118 = vmatprep.subr.bf16.mxu0 %v2464_v49 }
0x1126   :  { %2338 = vpow2.f32 %v2023_v31 }
0x1128   :  { %2119 = vmatpush3.bf16.msra.mxu0 %v2234_v5 }
0x1129   :  { %2120 = vmatprep.subr.bf16.mxu0 %v2464_v49 }
0x112b   :  { %v1628_v20 = vpop.f32.mrb[28].mxu0 }
0x112c   :  { %v2088_v22 = vpop.f32.mrb[29].mxu0  ;;  %v1629_v38 = vadd.f32 %v2027_v39, %v1628_v20 }
0x112d   :  { %v1631_v24 = vpop.f32.mrb[30].mxu0 }
0x112e   :  { %v2089_v25 = vpop.f32.mrb[31].mxu0  ;;  %v1634_v42 = vmax.f32 %v1629_v38, 0.0 }
0x112f   :  { %v2337_v7 = vpop.eup %2336 }
0x1130   :  { %v1432_v8 = vmul.f32 %v2337_v7, %v2335_v6  ;;  %v2339_v30 = vpop.eup %2338  ;;  %v1431_v16 = vmul.f32 %v2337_v7, %v1429_v9  ;;  %v1635_v44 = vpack.c.bf16 %v1634_v42, %v1634_v42 }
0x1131   :  { %v1421_v12 = vadd.f32 1.0, %v2339_v30 }
0x1132   :  { %1434 = vrot.lane.b32.xlu0 %v1432_v8, %s2459_s21 }
0x1133   :  { %2340 = vrcp.f32 %v1421_v12  ;;  %v2235_v12 = vld [vmem:[#allocation5 + $0x18] sm:$0xff]  }
0x1134   :  { %2121 = vmatpush3.bf16.msra.mxu0 %v2235_v12 }
0x113d   :  { %v2341_v19 = vpop.eup %2340 }
0x11a4   :  { %v1435_v17 = vpop.permute.xlu0 %1434 }
0x11a5   :  { %v1437_v18 = vadd.f32 %v1435_v17, %v1431_v16  ;;  %v2035_v16 = vld [vmem:[%s3194_s13] ss:$0 sm:$0xff] }
0x11a7   :  { %2342 = vtanh.f32 %v1437_v18  ;;  %1447 = vrot.lane.b32.xlu0 %v1437_v18, %s2459_s21 }
0x11b1   :  { %v2343_v21 = vpop.eup %2342 }
0x11b2   :  { %v1439_v23 = vmul.f32 %v2343_v21, %v2341_v19 }
0x11b4   :  { %1442 = vrot.lane.b32.xlu1 %v1439_v23, %s2459_s21 }
0x1219   :  { %v1448_v41 = vpop.permute.xlu0 %1447 }
0x121a   :  { %v1450_v46 = vsel %vm1440_vm12, %v1448_v41, %v3063_v43  ;;  %v2227_v43 = vld [vmem:[#allocation2 + $0x18] sm:$0xff]  }
0x121b   :  { %1512 = vrot.lane.b32.xlu1 %v1450_v46, %s2459_s21 }
0x121f   :  { %1722 = vperm.xlu1 %2157, %v1720_v28  }
0x1226   :  { %v1443_v29 = vpop.permute.xlu1 %1442 }
0x1227   :  { %v3123_v34 = vsel %vm1440_vm12, %v1443_v29, %v3067_v45  ;;  %v639_v45 = vadd.f32 %v2853_v14, %v3023_v33  ;;  %v2228_v14 = vld [vmem:[#allocation7] sm:$0xff]   ;;  %v2229_v33 = vld [vmem:[#allocation7 + $0x8] sm:$0xff]  }
0x1228   :  { %v1451_v36 = vpack.c.bf16 %v3123_v34, %v3123_v34 }
0x122a   :  { %2024 = vmatmul.mubr.msk.bf16.vlgmr.msra.gmra.mrb[28].mxu1 %vm699_vm4, %v1451_v36  ;;  %v2051_v36 = vld [vmem:[%s3197_s16] ss:$0 sm:$0xff] }
0x122b   :  { %2091 = vmatpush3.bf16.msra.mxu1 %v2224_v35  ;;  %2098 = vmatprep.mubr.msk.bf16.mxu1 %vm2465_vm9, %v2464_v49 }
0x122c   :  { %2092 = vmatprep.subr.bf16.mxu1 %v2464_v49 }
0x122f   :  { %2093 = vmatpush3.bf16.msra.mxu1 %v2225_v37 }
0x1230   :  { %2094 = vmatprep.subr.bf16.mxu1 %v2464_v49 }
0x1233   :  { %2095 = vmatpush3.bf16.msra.mxu1 %v2226_v40 }
0x1234   :  { %2096 = vmatprep.subr.bf16.mxu1 %v2464_v49 }
0x1237   :  { %2097 = vmatpush3.bf16.msra.mxu1 %v2227_v43 }
0x1238   :  { %2102 = vmatprep.subr.bf16.mxu1 %v2464_v49 }
0x123a   :  { %2099 = vmatmul.mubr.msk.bf16.vlgmr.msra.gmra.mrb[32].mxu1 %vm699_vm4, %v1635_v44 }
0x123b   :  { %2110 = vmatprep.mubr.msk.bf16.mxu1 %vm2465_vm9, %v2464_v49  ;;  %2103 = vmatpush3.bf16.msra.mxu1 %v2228_v14 }
0x123c   :  { %2104 = vmatprep.subr.bf16.mxu1 %v2464_v49 }
0x123f   :  { %2105 = vmatpush3.bf16.msra.mxu1 %v2229_v33 }
0x1240   :  { %2106 = vmatprep.subr.bf16.mxu1 %v2464_v49 }
0x1243   :  { %2107 = vmatpush3.bf16.msra.mxu1 %v2230_v15 }
0x1244   :  { %2108 = vmatprep.subr.bf16.mxu1 %v2464_v49 }
0x1247   :  { %2109 = vmatpush3.bf16.msra.mxu1 %v2231_v2 }
0x128d   :  { %v1513_v8 = vpop.permute.xlu1 %1512 }
0x129e   :  { %v1723_v49 = vpop.permute.xlu1 %1722 }
0x129f   :  { %vm1724_vm15 = vcmp.eq.s32.totalorder %v1723_v49, 1 }
0x12fd   :  { %v1489_v48 = vpop.f32.mrb[28].mxu1 }
0x12fe   :  { %v1496_v50 = vadd.f32 %v1489_v48, %v639_v45  ;;  %v1491_v51 = vpop.f32.mrb[29].mxu1 }
0x12ff   :  { %v1497_v53 = vadd.f32 %v1491_v51, %v640_v47  ;;  %v1493_v54 = vpop.f32.mrb[30].mxu1 }
0x1300   :  { %v2025_v55 = vmul.f32 -1.442695, %v1496_v50  ;;  %v1494_v56 = vpop.f32.mrb[31].mxu1 }
0x1301   :  { %v2026_v6 = vmul.f32 -1.442695, %v1497_v53 }
0x1302   :  { %2344 = vpow2.f32 %v2025_v55 }
0x1303   :  { %2346 = vtanh.f32 %v1497_v53 }
0x130c   :  { %v2345_v57 = vpop.eup %2344 }
0x130d   :  { %v1504_v58 = vadd.f32 1.0, %v2345_v57  ;;  %v1712_v59 = vpop.f32.mrb[32].mxu1  ;;  %v2347_v32 = vpop.eup %2346 }
0x130e   :  { %v2100_v60 = vpop.f32.mrb[33].mxu1  ;;  %v1713_v17 = vadd.f32 %v2035_v16, %v1712_v59 }
0x130f   :  { %2348 = vrcp.f32 %v1504_v58  ;;  %v1715_v61 = vpop.f32.mrb[34].mxu1 }
0x1310   :  { %v2101_v62 = vpop.f32.mrb[35].mxu1  ;;  %2350 = vpow2.f32 %v2026_v6  ;;  %v1728_v20 = vrot.slane %v1713_v17, %v613_v11  ;;  %v1739_v22 = vrot.slane %v1713_v17, %v617_v13 }
0x1312   :  { %v1729_v24 = vsel %vm1724_vm15, %v1728_v20, 0.0 }
0x1319   :  { %v2349_v63 = vpop.eup %2348 }
0x131a   :  { %v1516_v1 = vmul.f32 %v2349_v63, %v2347_v32  ;;  %v2351_v7 = vpop.eup %2350  ;;  %v1515_v31 = vmul.f32 %v2349_v63, %v1513_v8 }
0x131b   :  { %v1505_v0 = vadd.f32 1.0, %v2351_v7 }
0x131c   :  { %1518 = vrot.lane.b32.xlu0 %v1516_v1, %s2459_s21 }
0x131d   :  { %2352 = vrcp.f32 %v1505_v0 }
0x1320   :  { %1733 = vperm.xlu0 %2156, %v1731_v27  }
0x1327   :  { %v2353_v18 = vpop.eup %2352 }
0x138e   :  { %v1519_v30 = vpop.permute.xlu0 %1518 }
0x138f   :  { %v1521_v9 = vadd.f32 %v1519_v30, %v1515_v31 }
0x1391   :  { %2354 = vtanh.f32 %v1521_v9 }
0x139b   :  { %v2355_v19 = vpop.eup %2354 }
0x139c   :  { %v1523_v21 = vmul.f32 %v2355_v19, %v2353_v18 }
0x139e   :  { %1526 = vrot.lane.b32.xlu1 %v1523_v21, %s2459_s21 }
0x139f   :  { %v1734_v23 = vpop.permute.xlu0 %1733 }
0x13a0   :  { %vm1735_vm0 = vcmp.eq.s32.totalorder %v1734_v23, 1 }
0x13a1   :  { %v1740_v25 = vsel %vm1735_vm0, %v1739_v22, %v1729_v24 }
0x13a2   :  { %v1750_v26 = vpack.c.bf16 %v1740_v25, %v1740_v25 }
0x13a4   :  { %2111 = vmatmul.mubr.msk.bf16.vlgmr.msra.gmra.mrb[36].mxu1 %vm699_vm4, %v1750_v26 }
0x1410   :  { %v1527_v41 = vpop.permute.xlu1 %1526 }
0x1411   :  { %v1529_v46 = vsel %vm1524_vm1, %v1527_v41, %v3123_v34 }
0x1412   :  { %v1741_v11 = vpack.c.bf16 %v1529_v46, %v1529_v46 }
0x1414   :  { %2123 = vmatmul.mubr.msk.bf16.vlgmr.msra.gmra.mrb[32].mxu0 %vm699_vm4, %v1741_v11 }
0x1477   :  { %v1820_v10 = vpop.f32.mrb[36].mxu1 }
0x1478   :  { %v2112_v13 = vpop.f32.mrb[37].mxu1 }
0x1479   :  { %v1823_v28 = vpop.f32.mrb[38].mxu1 }
0x147a   :  { %v2113_v29 = vpop.f32.mrb[39].mxu1 }
0x14e7   :  { %v1887_v35 = vpop.f32.mrb[32].mxu0 }
0x14e8   :  { %v1888_v37 = vadd.f32 %v1887_v35, %v1820_v10  ;;  %v2124_v39 = vpop.f32.mrb[33].mxu0 }
0x14e9   :  { %v1890_v52 = vpop.f32.mrb[34].mxu0 }
0x14ea   :  { %v1900_v38 = vadd.f32 %v2051_v36, %v1888_v37  ;;  %v2125_v40 = vpop.f32.mrb[35].mxu0 }
0x14ec   :  { %1901 = vst.msk [vmem:[#allocation8] sm:$0xff] %vm699_vm4, %v1900_v38 }
0x14ed   :  { %2440 = shalt.err (!%p2437_p0)
}
0x14ee   :  { %s2441_s16 = scalar_lea.hbm %s3198_s17, 128 }
0x14ef   :  { %p2442_p1 = scmp.ne.s32.totalorder %s3198_s17, %s2441_s16  ;;  %p2445_p2 = scmp.lt.u32.totalorder %s2441_s16, %s3198_s17 }
0x14f1   :  { %p2447_p3 = pnand %p2445_p2, %p2442_p1 }
0x14f3   :  { %2450 = shalt.err (!%p2447_p3)
}
0x14f4   :  { %1911 = dma.vmem_to_hbm [thread:$0]  %s1909_s28, 128, %s3198_s17, [#allocation4]  }
0x14f5   :  { %2455 = dma.done.wait [#allocation4], 128  }
0x14f6   :  { %2456 = vsyncadd [#allocation4], 4294967168 }
0x14f7   :  { %1915 = vsyncpa [#allocation3], 1 }
0x14f8   :  { %1916 = vsyncpa [#allocation6], 1 }
0x14f9   :  { %1917 = vsyncpa [#allocation4], 1 }

</bundles_post_ra>
